<compile_context>
chip_gen: v7x
topology: tpu7x:2x2x1
jax: 0.10.0
libtpu: 0.0.40
codegen_flags: <defaults>
</compile_context>

<pallas_src>
import functools

import jax
import jax.numpy as jnp
from jax.experimental import pallas as pl
from jax.experimental.pallas import tpu as pltpu

EPS = 1e-6
SECOND_DIM = 4
GROUPS = 32
# Safe on v5e/v6e (128 MiB physical) and v7x (64 MiB physical); above all default scoped limits.
VMEM_LIMIT = 48 * 1024 * 1024

_CPARAMS = pltpu.CompilerParams(
    dimension_semantics=("parallel", "arbitrary"),
    vmem_limit_bytes=VMEM_LIMIT,
)


def _silu(x):
    return x * jax.nn.sigmoid(x)


def _group_norm(x, red, bcast, gamma, beta):
    """GroupNorm via (C, G) reduction + (G, C) broadcast matrices. All f32 (O(B*C*G))."""
    xf = x.astype(jnp.float32)
    mean_g = jnp.dot(xf, red, preferred_element_type=jnp.float32)       # (B, G)
    ex2_g = jnp.dot(xf * xf, red, preferred_element_type=jnp.float32)   # (B, G)
    mean = jnp.dot(mean_g, bcast, preferred_element_type=jnp.float32)   # (B, C)
    ex2 = jnp.dot(ex2_g, bcast, preferred_element_type=jnp.float32)     # (B, C)
    var = ex2 - mean * mean                                             # biased, matches torch
    inv = jax.lax.rsqrt(var + EPS)
    return (xf - mean) * inv * gamma + beta


def _gn_matrices(C, G):
    gs = C // G
    gid = jnp.arange(C) // gs
    onehot = (gid[:, None] == jnp.arange(G)[None, :]).astype(jnp.float32)  # (C, G)
    return onehot / gs, onehot.T   # reduce (C, G) with 1/gs entries, broadcast-back (G, C)


def _tile(dim, preferred):
    """Largest multiple of 128 that divides `dim` and is <= preferred (dim % 128 == 0)."""
    best, t, lim = 128, 128, min(dim, preferred)
    while t <= lim:
        if dim % t == 0:
            best = t
        t += 128
    return best


# --------------------------------------------------------------------------------------
# Stage 1: norm1 -> silu -> [conv1 fused with time_emb_proj]  and  conv_shortcut.
# Grid (n over cout tiles, k over (cin + temb) tiles); k is the reduction axis.
# --------------------------------------------------------------------------------------
def _stage1_kernel(x_ref, temb_ref, g1_ref, b1_ref, red1_ref, bc1_ref,
                   xz_ref, w1_ref, wsc_ref, b1c_ref, bsc_ref,
                   h1_ref, sc_ref, a1_scr, *, cin, tdim, tk):
    k = pl.program_id(1)

    @pl.when(k == 0)
    def _():
        # a1 = concat(silu(gn1(x)), silu(temb)) -- recomputed per n tile (cheap, VPU only)
        a = _silu(_group_norm(x_ref[...], red1_ref[...], bc1_ref[...],
                              g1_ref[...], b1_ref[...]))
        a1_scr[:, pl.ds(0, cin)] = a
        a1_scr[:, pl.ds(cin, tdim)] = _silu(temb_ref[...].astype(jnp.float32))
        h1_ref[...] = jnp.zeros_like(h1_ref)
        sc_ref[...] = jnp.zeros_like(sc_ref)

    off = pl.multiple_of(k * tk, 128)
    a1_t = a1_scr[:, pl.ds(off, tk)].astype(jnp.bfloat16)
    x_t = xz_ref[...].astype(jnp.bfloat16)
    h1_ref[...] += jnp.dot(a1_t, w1_ref[...], preferred_element_type=jnp.float32)
    sc_ref[...] += jnp.dot(x_t, wsc_ref[...], preferred_element_type=jnp.float32)

    @pl.when(k == pl.num_programs(1) - 1)
    def _():
        h1_ref[...] += b1c_ref[...]   # conv1 bias + time_emb_proj bias
        sc_ref[...] += bsc_ref[...]   # conv_shortcut bias


# --------------------------------------------------------------------------------------
# Stage 2: norm2 -> silu -> dropout(identity) -> conv2, then add shortcut.
# Grid (n over cout tiles, k over cout reduction tiles).
# --------------------------------------------------------------------------------------
def _stage2_kernel(h1_ref, sc_ref, g2_ref, b2_ref, red2_ref, bc2_ref,
                   w2_ref, wb2_ref, res_ref, a2_scr, *, tk):
    k = pl.program_id(1)

    @pl.when(k == 0)
    def _():
        a2_scr[...] = _silu(_group_norm(h1_ref[...], red2_ref[...], bc2_ref[...],
                                        g2_ref[...], b2_ref[...]))
        res_ref[...] = jnp.zeros_like(res_ref)

    off = pl.multiple_of(k * tk, 128)
    a2_t = a2_scr[:, pl.ds(off, tk)].astype(jnp.bfloat16)
    res_ref[...] += jnp.dot(a2_t, w2_ref[...], preferred_element_type=jnp.float32)

    @pl.when(k == pl.num_programs(1) - 1)
    def _():
        res_ref[...] += sc_ref[...] + wb2_ref[...]


# --------------------------------------------------------------------------------------
# Stage 3: LinearMultiDim upsampler (plain linear on the flattened features).
# --------------------------------------------------------------------------------------
def _stage3_kernel(res_ref, wu_ref, bu_ref, o_ref):
    k = pl.program_id(1)

    @pl.when(k == 0)
    def _():
        o_ref[...] = jnp.zeros_like(o_ref)

    o_ref[...] += jnp.dot(res_ref[...].astype(jnp.bfloat16), wu_ref[...],
                          preferred_element_type=jnp.float32)

    @pl.when(k == pl.num_programs(1) - 1)
    def _():
        o_ref[...] += bu_ref[...]


def upblock_flat(hidden_states, res_hidden_states_tuple, temb, params):
    """hidden_states: (B, prev_C, 4, 1); res_*: tuple of (B, skip_C, 4, 1); temb: (B, T)."""
    res = res_hidden_states_tuple[-1]
    x = jnp.concatenate([hidden_states, res], axis=1)           # torch.cat(dim=1)
    B, C, sd, last = x.shape
    cin = C * sd * last
    x2d = x.reshape(B, cin).astype(jnp.float32)
    temb = temb.astype(jnp.float32)
    T = temb.shape[1]
    cout = params["w1"].shape[1]
    cout_up = params["wu"].shape[1]
    G = GROUPS

    # Real versatile-diffusion widths satisfy these; keeps every tile lane-dense.
    assert cin % 128 == 0 and T % 128 == 0 and cout % 128 == 0 and cout_up % 128 == 0
    assert cin % G == 0 and cout % G == 0

    # ---- fused / padded operands ----
    K1 = cin + T
    w1cat = jnp.concatenate([params["w1"], params["wt"]], axis=0)            # bf16 (K1, cout)
    wscz = jnp.concatenate(
        [params["wsc"], jnp.zeros((T, cout), params["wsc"].dtype)], axis=0)  # bf16 (K1, cout)
    xz = jnp.concatenate([x2d, jnp.zeros((B, T), jnp.float32)], axis=1)      # (B, K1)
    b1c = params["wb1"] + params["bt"]                                       # (1, cout) f32
    red1, bc1 = _gn_matrices(cin, G)
    red2, bc2 = _gn_matrices(cout, G)

    # ================= Stage 1 =================
    tk1 = _tile(K1, 512)
    tn1 = _tile(cout, 256)
    h1, sc = pl.pallas_call(
        functools.partial(_stage1_kernel, cin=cin, tdim=T, tk=tk1),
        out_shape=(jax.ShapeDtypeStruct((B, cout), jnp.float32),
                   jax.ShapeDtypeStruct((B, cout), jnp.float32)),
        grid_spec=pltpu.PrefetchScalarGridSpec(
            num_scalar_prefetch=0,
            grid=(cout // tn1, K1 // tk1),
            in_specs=[
                pl.BlockSpec((B, cin), lambda n, k: (0, 0)),      # x2d (full, tiny)
                pl.BlockSpec((B, T), lambda n, k: (0, 0)),        # temb
                pl.BlockSpec((1, cin), lambda n, k: (0, 0)),      # gamma1
                pl.BlockSpec((1, cin), lambda n, k: (0, 0)),      # beta1
                pl.BlockSpec((cin, G), lambda n, k: (0, 0)),      # gn1 reduce
                pl.BlockSpec((G, cin), lambda n, k: (0, 0)),      # gn1 broadcast
                pl.BlockSpec((B, tk1), lambda n, k: (0, k)),      # x zero-padded, K tiles
                pl.BlockSpec((tk1, tn1), lambda n, k: (k, n)),    # [w1; wt] bf16 tiles
                pl.BlockSpec((tk1, tn1), lambda n, k: (k, n)),    # [wsc; 0] bf16 tiles
                pl.BlockSpec((1, tn1), lambda n, k: (0, n)),      # conv1+time bias
                pl.BlockSpec((1, tn1), lambda n, k: (0, n)),      # shortcut bias
            ],
            out_specs=(pl.BlockSpec((B, tn1), lambda n, k: (0, n)),
                       pl.BlockSpec((B, tn1), lambda n, k: (0, n))),
            scratch_shapes=[pltpu.VMEM((B, K1), jnp.float32)],
        ),
        compiler_params=_CPARAMS,
    )(x2d, temb, params["g1"], params["b1"], red1, bc1,
      xz, w1cat, wscz, b1c, params["bsc"])

    # ================= Stage 2 =================
    tk2 = _tile(cout, 512)
    tn2 = _tile(cout, 256)
    resid = pl.pallas_call(
        functools.partial(_stage2_kernel, tk=tk2),
        out_shape=jax.ShapeDtypeStruct((B, cout), jnp.float32),
        grid_spec=pltpu.PrefetchScalarGridSpec(
            num_scalar_prefetch=0,
            grid=(cout // tn2, cout // tk2),
            in_specs=[
                pl.BlockSpec((B, cout), lambda n, k: (0, 0)),     # h1 (full, tiny)
                pl.BlockSpec((B, tn2), lambda n, k: (0, n)),      # shortcut, N tiles
                pl.BlockSpec((1, cout), lambda n, k: (0, 0)),     # gamma2
                pl.BlockSpec((1, cout), lambda n, k: (0, 0)),     # beta2
                pl.BlockSpec((cout, G), lambda n, k: (0, 0)),     # gn2 reduce
                pl.BlockSpec((G, cout), lambda n, k: (0, 0)),     # gn2 broadcast
                pl.BlockSpec((tk2, tn2), lambda n, k: (k, n)),    # w2 bf16 tiles
                pl.BlockSpec((1, tn2), lambda n, k: (0, n)),      # conv2 bias
            ],
            out_specs=pl.BlockSpec((B, tn2), lambda n, k: (0, n)),
            scratch_shapes=[pltpu.VMEM((B, cout), jnp.float32)],
        ),
        compiler_params=_CPARAMS,
    )(h1, sc, params["g2"], params["b2"], red2, bc2, params["w2"], params["wb2"])

    # ================= Stage 3 (upsampler) =================
    tk3 = _tile(cout, 512)
    tn3 = _tile(cout_up, 256)
    out2d = pl.pallas_call(
        _stage3_kernel,
        out_shape=jax.ShapeDtypeStruct((B, cout_up), jnp.float32),
        grid_spec=pltpu.PrefetchScalarGridSpec(
            num_scalar_prefetch=0,
            grid=(cout_up // tn3, cout // tk3),
            in_specs=[
                pl.BlockSpec((B, tk3), lambda n, k: (0, k)),      # resnet output, K tiles
                pl.BlockSpec((tk3, tn3), lambda n, k: (k, n)),    # wu bf16 tiles
                pl.BlockSpec((1, tn3), lambda n, k: (0, n)),      # bu
            ],
            out_specs=pl.BlockSpec((B, tn3), lambda n, k: (0, n)),
        ),
        compiler_params=_CPARAMS,
    )(resid, params["wu"], params["bu"])

    return out2d.reshape(B, cout_up // (sd * last), sd, last)


# --------------------------------------------------------------------------------------
# Parameters + pure-JAX reference
# --------------------------------------------------------------------------------------
def init_params(key, prev_c, skip_c, out_c, temb_c):
    cin = (prev_c + skip_c) * SECOND_DIM
    cout = out_c * SECOND_DIM
    ks = jax.random.split(key, 14)

    def w(k, i, o):  # bf16 weights (MXU-native, halves HBM traffic)
        return (jax.random.normal(k, (i, o), jnp.float32) / jnp.sqrt(i)).astype(jnp.bfloat16)

    def b(k, o):
        return 0.1 * jax.random.normal(k, (1, o), jnp.float32)

    return dict(
        g1=1.0 + 0.1 * jax.random.normal(ks[0], (1, cin), jnp.float32),
        b1=0.1 * jax.random.normal(ks[1], (1, cin), jnp.float32),
        w1=w(ks[2], cin, cout), wb1=b(ks[3], cout),
        wt=w(ks[4], temb_c, cout), bt=b(ks[5], cout),
        g2=1.0 + 0.1 * jax.random.normal(ks[6], (1, cout), jnp.float32),
        b2=0.1 * jax.random.normal(ks[7], (1, cout), jnp.float32),
        w2=w(ks[8], cout, cout), wb2=b(ks[9], cout),
        wsc=w(ks[10], cin, cout), bsc=b(ks[11], cout),
        wu=w(ks[12], cout, cout), bu=b(ks[13], cout),
    )


def ref_upblock_flat(hidden_states, res_tuple, temb, p):
    """Pure-JAX reference matching the PyTorch forward (same bf16 matmul-input numerics)."""
    x = jnp.concatenate([hidden_states, res_tuple[-1]], axis=1)
    B = x.shape[0]
    x2 = x.reshape(B, -1).astype(jnp.float32)

    def gn(v, gamma, beta):
        Cc = v.shape[-1]
        vr = v.reshape(B, GROUPS, Cc // GROUPS)
        m = vr.mean(-1, keepdims=True)
        va = vr.var(-1, keepdims=True)
        return ((vr - m) / jnp.sqrt(va + EPS)).reshape(B, Cc) * gamma + beta

    def mm(a, w):  # bf16 operands, f32 accumulation — mirrors the kernel dots
        return jnp.dot(a.astype(jnp.bfloat16).astype(jnp.float32),
                       w.astype(jnp.float32), preferred_element_type=jnp.float32)

    a1 = _silu(gn(x2, p["g1"], p["b1"]))
    t = _silu(temb.astype(jnp.float32))
    h = mm(a1, p["w1"]) + mm(t, p["wt"]) + p["wb1"] + p["bt"]
    sc = mm(x2, p["wsc"]) + p["bsc"]
    a2 = _silu(gn(h, p["g2"], p["b2"]))
    h2 = mm(a2, p["w2"]) + p["wb2"]
    res = sc + h2
    out = mm(res, p["wu"]) + p["bu"]
    return out.reshape(B, -1, SECOND_DIM, 1)


if __name__ == "__main__":
    # Small config consistent with UpBlockFlat defaults (num_layers=1, add_upsample=True).
    # resnet in_channels (32) != out_channels (64) -> conv_shortcut present, as in the model.
    B = 2
    in_channels = 16            # skip-connection channels
    prev_output_channel = 16    # incoming hidden-state channels
    out_channels = 64
    temb_channels = 128

    key = jax.random.PRNGKey(0)
    k_h, k_r, k_t, k_p = jax.random.split(key, 4)
    hidden_states = jax.random.normal(k_h, (B, prev_output_channel, SECOND_DIM, 1), jnp.float32)
    res_hidden = (jax.random.normal(k_r, (B, in_channels, SECOND_DIM, 1), jnp.float32),)
    temb = jax.random.normal(k_t, (B, temb_channels), jnp.float32)
    params = init_params(k_p, prev_output_channel, in_channels, out_channels, temb_channels)

    out = jax.block_until_ready(jax.jit(upblock_flat)(hidden_states, res_hidden, temb, params))
    ref = jax.block_until_ready(ref_upblock_flat(hidden_states, res_hidden, temb, params))

    assert out.shape == (B, out_channels, SECOND_DIM, 1), out.shape
    max_err = float(jnp.max(jnp.abs(out - ref)))
    assert jnp.allclose(out, ref, atol=2e-2, rtol=2e-2), max_err

    print("KERNEL_OK")
</pallas_src>

<mosaic_0001>
module attributes {stable_mosaic.version = 11 : i64} {
  func.func @_stage1_kernel(%arg0: i32, %arg1: i32, %arg2: memref<2x128xf32, #tpu.memory_space<vmem>>, %arg3: memref<2x128xf32, #tpu.memory_space<vmem>>, %arg4: memref<1x128xf32, #tpu.memory_space<vmem>>, %arg5: memref<1x128xf32, #tpu.memory_space<vmem>>, %arg6: memref<128x32xf32, #tpu.memory_space<vmem>>, %arg7: memref<32x128xf32, #tpu.memory_space<vmem>>, %arg8: memref<2x256xf32, #tpu.memory_space<vmem>>, %arg9: memref<256x256xbf16, #tpu.memory_space<vmem>>, %arg10: memref<256x256xbf16, #tpu.memory_space<vmem>>, %arg11: memref<1x256xf32, #tpu.memory_space<vmem>>, %arg12: memref<1x256xf32, #tpu.memory_space<vmem>>, %arg13: memref<2x256xf32, #tpu.memory_space<vmem>>, %arg14: memref<2x256xf32, #tpu.memory_space<vmem>>, %arg15: memref<2x256xf32, #tpu.memory_space<vmem>>) attributes {dimension_semantics = [#tpu.dimension_semantics<parallel>, #tpu.dimension_semantics<arbitrary>], iteration_bounds = array<i64: 1, 1>, scalar_prefetch = 0 : i64, scratch_operands = 1 : i64, tpu.core_type = #tpu.core_type<tc>, window_params = [{pipeline_mode = #tpu.pipeline_mode<synchronous>, transform_indices = @transform_0, window_bounds = array<i64: 2, 128>}, {pipeline_mode = #tpu.pipeline_mode<synchronous>, transform_indices = @transform_1, window_bounds = array<i64: 2, 128>}, {pipeline_mode = #tpu.pipeline_mode<synchronous>, transform_indices = @transform_2, window_bounds = array<i64: 1, 128>}, {pipeline_mode = #tpu.pipeline_mode<synchronous>, transform_indices = @transform_3, window_bounds = array<i64: 1, 128>}, {pipeline_mode = #tpu.pipeline_mode<synchronous>, transform_indices = @transform_4, window_bounds = array<i64: 128, 32>}, {pipeline_mode = #tpu.pipeline_mode<synchronous>, transform_indices = @transform_5, window_bounds = array<i64: 32, 128>}, {transform_indices = @transform_6, window_bounds = array<i64: 2, 256>}, {transform_indices = @transform_7, window_bounds = array<i64: 256, 256>}, {transform_indices = @transform_8, window_bounds = array<i64: 256, 256>}, {transform_indices = @transform_9, window_bounds = array<i64: 1, 256>}, {transform_indices = @transform_10, window_bounds = array<i64: 1, 256>}, {transform_indices = @transform_11, window_bounds = array<i64: 2, 256>}, {transform_indices = @transform_12, window_bounds = array<i64: 2, 256>}]} {
    %c0_i32 = arith.constant 0 : i32
    %0 = arith.cmpi eq, %arg1, %c0_i32 : i32
    %1 = arith.extui %0 : i1 to i32
    %c0_i32_0 = arith.constant 0 : i32
    %2 = arith.cmpi ne, %1, %c0_i32_0 : i32
    scf.if %2 {
      %c0_18 = arith.constant 0 : index
      %c0_19 = arith.constant 0 : index
      %23 = vector.load %arg2[%c0_18, %c0_19] : memref<2x128xf32, #tpu.memory_space<vmem>>, vector<2x128xf32>
      %c0_20 = arith.constant 0 : index
      %c0_21 = arith.constant 0 : index
      %24 = vector.load %arg6[%c0_20, %c0_21] : memref<128x32xf32, #tpu.memory_space<vmem>>, vector<128x32xf32>
      %c0_22 = arith.constant 0 : index
      %c0_23 = arith.constant 0 : index
      %25 = vector.load %arg7[%c0_22, %c0_23] : memref<32x128xf32, #tpu.memory_space<vmem>>, vector<32x128xf32>
      %c0_24 = arith.constant 0 : index
      %c0_25 = arith.constant 0 : index
      %26 = vector.load %arg4[%c0_24, %c0_25] : memref<1x128xf32, #tpu.memory_space<vmem>>, vector<1x128xf32>
      %c0_26 = arith.constant 0 : index
      %c0_27 = arith.constant 0 : index
      %27 = vector.load %arg5[%c0_26, %c0_27] : memref<1x128xf32, #tpu.memory_space<vmem>>, vector<1x128xf32>
      %cst_28 = arith.constant dense<0.000000e+00> : vector<2x32xf32>
      %28 = tpu.matmul %23, %24, %cst_28 {dimension_numbers = #tpu.dot_dimension_numbers<[1], [0], [0], [1], [0, 0, 1, 1], [], []>} : vector<2x128xf32>, vector<128x32xf32>, vector<2x32xf32> -> vector<2x32xf32>
      %29 = arith.mulf %23, %23 : vector<2x128xf32>
      %cst_29 = arith.constant dense<0.000000e+00> : vector<2x32xf32>
      %30 = tpu.matmul %29, %24, %cst_29 {dimension_numbers = #tpu.dot_dimension_numbers<[1], [0], [0], [1], [0, 0, 1, 1], [], []>} : vector<2x128xf32>, vector<128x32xf32>, vector<2x32xf32> -> vector<2x32xf32>
      %cst_30 = arith.constant dense<0.000000e+00> : vector<2x128xf32>
      %31 = tpu.matmul %28, %25, %cst_30 {dimension_numbers = #tpu.dot_dimension_numbers<[1], [0], [0], [1], [0, 0, 1, 1], [], []>} : vector<2x32xf32>, vector<32x128xf32>, vector<2x128xf32> -> vector<2x128xf32>
      %cst_31 = arith.constant dense<0.000000e+00> : vector<2x128xf32>
      %32 = tpu.matmul %30, %25, %cst_31 {dimension_numbers = #tpu.dot_dimension_numbers<[1], [0], [0], [1], [0, 0, 1, 1], [], []>} : vector<2x32xf32>, vector<32x128xf32>, vector<2x128xf32> -> vector<2x128xf32>
      %33 = arith.mulf %31, %31 : vector<2x128xf32>
      %34 = arith.subf %32, %33 : vector<2x128xf32>
      %cst_32 = arith.constant 9.99999997E-7 : f32
      %35 = vector.broadcast %cst_32 : f32 to vector<2x128xf32>
      %36 = arith.addf %34, %35 : vector<2x128xf32>
      %37 = math.rsqrt %36 : vector<2x128xf32>
      %38 = arith.subf %23, %31 : vector<2x128xf32>
      %39 = arith.mulf %38, %37 : vector<2x128xf32>
      %40 = vector.broadcast %26 : vector<1x128xf32> to vector<2x128xf32>
      %41 = arith.mulf %39, %40 : vector<2x128xf32>
      %42 = vector.broadcast %27 : vector<1x128xf32> to vector<2x128xf32>
      %43 = arith.addf %41, %42 : vector<2x128xf32>
      %44 = arith.negf %43 : vector<2x128xf32>
      %45 = math.exp %44 : vector<2x128xf32>
      %cst_33 = arith.constant 1.000000e+00 : f32
      %46 = vector.broadcast %cst_33 : f32 to vector<2x128xf32>
      %47 = arith.addf %46, %45 : vector<2x128xf32>
      %48 = arith.divf %46, %47 : vector<2x128xf32>
      %49 = arith.mulf %43, %48 : vector<2x128xf32>
      %c0_34 = arith.constant 0 : index
      %c0_35 = arith.constant 0 : index
      %50 = vector.load %arg15[%c0_34, %c0_35] : memref<2x256xf32, #tpu.memory_space<vmem>>, vector<2x128xf32>
      tpu.vector_store %arg15[%c0_34, %c0_35], %49 {strides = array<i32>} : memref<2x256xf32, #tpu.memory_space<vmem>>, vector<2x128xf32>,
      %c0_36 = arith.constant 0 : index
      %c0_37 = arith.constant 0 : index
      %51 = vector.load %arg3[%c0_36, %c0_37] : memref<2x128xf32, #tpu.memory_space<vmem>>, vector<2x128xf32>
      %52 = arith.negf %51 : vector<2x128xf32>
      %53 = math.exp %52 : vector<2x128xf32>
      %cst_38 = arith.constant 1.000000e+00 : f32
      %54 = vector.broadcast %cst_38 : f32 to vector<2x128xf32>
      %55 = arith.addf %54, %53 : vector<2x128xf32>
      %56 = arith.divf %54, %55 : vector<2x128xf32>
      %57 = arith.mulf %51, %56 : vector<2x128xf32>
      %c0_39 = arith.constant 0 : index
      %c128 = arith.constant 128 : index
      %58 = vector.load %arg15[%c0_39, %c128] : memref<2x256xf32, #tpu.memory_space<vmem>>, vector<2x128xf32>
      tpu.vector_store %arg15[%c0_39, %c128], %57 {strides = array<i32>} : memref<2x256xf32, #tpu.memory_space<vmem>>, vector<2x128xf32>,
      %cst_40 = arith.constant 0.000000e+00 : f32
      %59 = vector.broadcast %cst_40 : f32 to vector<2x256xf32>
      %c0_41 = arith.constant 0 : index
      %c0_42 = arith.constant 0 : index
      %60 = vector.load %arg13[%c0_41, %c0_42] : memref<2x256xf32, #tpu.memory_space<vmem>>, vector<2x256xf32>
      tpu.vector_store %arg13[%c0_41, %c0_42], %59 {strides = array<i32>} : memref<2x256xf32, #tpu.memory_space<vmem>>, vector<2x256xf32>,
      %cst_43 = arith.constant 0.000000e+00 : f32
      %61 = vector.broadcast %cst_43 : f32 to vector<2x256xf32>
      %c0_44 = arith.constant 0 : index
      %c0_45 = arith.constant 0 : index
      %62 = vector.load %arg14[%c0_44, %c0_45] : memref<2x256xf32, #tpu.memory_space<vmem>>, vector<2x256xf32>
      tpu.vector_store %arg14[%c0_44, %c0_45], %61 {strides = array<i32>} : memref<2x256xf32, #tpu.memory_space<vmem>>, vector<2x256xf32>,
    } else {
    }
    %c256_i32 = arith.constant 256 : i32
    %3 = arith.muli %arg1, %c256_i32 : i32
    %4 = tpu.assume_multiple %3, 128 : i32
    %c0 = arith.constant 0 : index
    %5 = arith.index_cast %4 : i32 to index
    %6 = vector.load %arg15[%c0, %5] : memref<2x256xf32, #tpu.memory_space<vmem>>, vector<2x256xf32>
    %7 = arith.truncf %6 : vector<2x256xf32> to vector<2x256xbf16>
    %c0_1 = arith.constant 0 : index
    %c0_2 = arith.constant 0 : index
    %8 = vector.load %arg8[%c0_1, %c0_2] : memref<2x256xf32, #tpu.memory_space<vmem>>, vector<2x256xf32>
    %9 = arith.truncf %8 : vector<2x256xf32> to vector<2x256xbf16>
    %c0_3 = arith.constant 0 : index
    %c0_4 = arith.constant 0 : index
    %10 = vector.load %arg13[%c0_3, %c0_4] : memref<2x256xf32, #tpu.memory_space<vmem>>, vector<2x256xf32>
    %c0_5 = arith.constant 0 : index
    %c0_6 = arith.constant 0 : index
    %11 = vector.load %arg9[%c0_5, %c0_6] : memref<256x256xbf16, #tpu.memory_space<vmem>>, vector<256x256xbf16>
    %cst = arith.constant dense<0.000000e+00> : vector<2x256xf32>
    %12 = tpu.matmul %7, %11, %cst {dimension_numbers = #tpu.dot_dimension_numbers<[1], [0], [0], [1], [0, 0, 1, 1], [], []>} : vector<2x256xbf16>, vector<256x256xbf16>, vector<2x256xf32> -> vector<2x256xf32>
    %13 = arith.addf %10, %12 : vector<2x256xf32>
    %c0_7 = arith.constant 0 : index
    %c0_8 = arith.constant 0 : index
    %14 = vector.load %arg13[%c0_7, %c0_8] : memref<2x256xf32, #tpu.memory_space<vmem>>, vector<2x256xf32>
    tpu.vector_store %arg13[%c0_7, %c0_8], %13 {strides = array<i32>} : memref<2x256xf32, #tpu.memory_space<vmem>>, vector<2x256xf32>,
    %c0_9 = arith.constant 0 : index
    %c0_10 = arith.constant 0 : index
    %15 = vector.load %arg14[%c0_9, %c0_10] : memref<2x256xf32, #tpu.memory_space<vmem>>, vector<2x256xf32>
    %c0_11 = arith.constant 0 : index
    %c0_12 = arith.constant 0 : index
    %16 = vector.load %arg10[%c0_11, %c0_12] : memref<256x256xbf16, #tpu.memory_space<vmem>>, vector<256x256xbf16>
    %cst_13 = arith.constant dense<0.000000e+00> : vector<2x256xf32>
    %17 = tpu.matmul %9, %16, %cst_13 {dimension_numbers = #tpu.dot_dimension_numbers<[1], [0], [0], [1], [0, 0, 1, 1], [], []>} : vector<2x256xbf16>, vector<256x256xbf16>, vector<2x256xf32> -> vector<2x256xf32>
    %18 = arith.addf %15, %17 : vector<2x256xf32>
    %c0_14 = arith.constant 0 : index
    %c0_15 = arith.constant 0 : index
    %19 = vector.load %arg14[%c0_14, %c0_15] : memref<2x256xf32, #tpu.memory_space<vmem>>, vector<2x256xf32>
    tpu.vector_store %arg14[%c0_14, %c0_15], %18 {strides = array<i32>} : memref<2x256xf32, #tpu.memory_space<vmem>>, vector<2x256xf32>,
    %c0_i32_16 = arith.constant 0 : i32
    %20 = arith.cmpi eq, %arg1, %c0_i32_16 : i32
    %21 = arith.extui %20 : i1 to i32
    %c0_i32_17 = arith.constant 0 : i32
    %22 = arith.cmpi ne, %21, %c0_i32_17 : i32
    scf.if %22 {
      %c0_18 = arith.constant 0 : index
      %c0_19 = arith.constant 0 : index
      %23 = vector.load %arg13[%c0_18, %c0_19] : memref<2x256xf32, #tpu.memory_space<vmem>>, vector<2x256xf32>
      %c0_20 = arith.constant 0 : index
      %c0_21 = arith.constant 0 : index
      %24 = vector.load %arg11[%c0_20, %c0_21] : memref<1x256xf32, #tpu.memory_space<vmem>>, vector<1x256xf32>
      %25 = vector.broadcast %24 : vector<1x256xf32> to vector<2x256xf32>
      %26 = arith.addf %23, %25 : vector<2x256xf32>
      %c0_22 = arith.constant 0 : index
      %c0_23 = arith.constant 0 : index
      %27 = vector.load %arg13[%c0_22, %c0_23] : memref<2x256xf32, #tpu.memory_space<vmem>>, vector<2x256xf32>
      tpu.vector_store %arg13[%c0_22, %c0_23], %26 {strides = array<i32>} : memref<2x256xf32, #tpu.memory_space<vmem>>, vector<2x256xf32>,
      %c0_24 = arith.constant 0 : index
      %c0_25 = arith.constant 0 : index
      %28 = vector.load %arg14[%c0_24, %c0_25] : memref<2x256xf32, #tpu.memory_space<vmem>>, vector<2x256xf32>
      %c0_26 = arith.constant 0 : index
      %c0_27 = arith.constant 0 : index
      %29 = vector.load %arg12[%c0_26, %c0_27] : memref<1x256xf32, #tpu.memory_space<vmem>>, vector<1x256xf32>
      %30 = vector.broadcast %29 : vector<1x256xf32> to vector<2x256xf32>
      %31 = arith.addf %28, %30 : vector<2x256xf32>
      %c0_28 = arith.constant 0 : index
      %c0_29 = arith.constant 0 : index
      %32 = vector.load %arg14[%c0_28, %c0_29] : memref<2x256xf32, #tpu.memory_space<vmem>>, vector<2x256xf32>
      tpu.vector_store %arg14[%c0_28, %c0_29], %31 {strides = array<i32>} : memref<2x256xf32, #tpu.memory_space<vmem>>, vector<2x256xf32>,
    } else {
    }
    return
  }
  func.func @transform_0(%arg0: i32, %arg1: i32) -> (i32, i32) {
    %c0_i32 = arith.constant 0 : i32
    %c0_i32_0 = arith.constant 0 : i32
    %c0_i32_1 = arith.constant 0 : i32
    return %c0_i32, %c0_i32_0 : i32, i32
  }
  func.func @transform_1(%arg0: i32, %arg1: i32) -> (i32, i32) {
    %c0_i32 = arith.constant 0 : i32
    %c0_i32_0 = arith.constant 0 : i32
    %c0_i32_1 = arith.constant 0 : i32
    return %c0_i32, %c0_i32_0 : i32, i32
  }
  func.func @transform_2(%arg0: i32, %arg1: i32) -> (i32, i32) {
    %c0_i32 = arith.constant 0 : i32
    %c0_i32_0 = arith.constant 0 : i32
    %c0_i32_1 = arith.constant 0 : i32
    return %c0_i32, %c0_i32_0 : i32, i32
  }
  func.func @transform_3(%arg0: i32, %arg1: i32) -> (i32, i32) {
    %c0_i32 = arith.constant 0 : i32
    %c0_i32_0 = arith.constant 0 : i32
    %c0_i32_1 = arith.constant 0 : i32
    return %c0_i32, %c0_i32_0 : i32, i32
  }
  func.func @transform_4(%arg0: i32, %arg1: i32) -> (i32, i32) {
    %c0_i32 = arith.constant 0 : i32
    %c0_i32_0 = arith.constant 0 : i32
    %c0_i32_1 = arith.constant 0 : i32
    return %c0_i32, %c0_i32_0 : i32, i32
  }
  func.func @transform_5(%arg0: i32, %arg1: i32) -> (i32, i32) {
    %c0_i32 = arith.constant 0 : i32
    %c0_i32_0 = arith.constant 0 : i32
    %c0_i32_1 = arith.constant 0 : i32
    return %c0_i32, %c0_i32_0 : i32, i32
  }
  func.func @transform_6(%arg0: i32, %arg1: i32) -> (i32, i32) {
    %c0_i32 = arith.constant 0 : i32
    %c0_i32_0 = arith.constant 0 : i32
    return %c0_i32, %arg1 : i32, i32
  }
  func.func @transform_7(%arg0: i32, %arg1: i32) -> (i32, i32) {
    %c0_i32 = arith.constant 0 : i32
    return %arg1, %arg0 : i32, i32
  }
  func.func @transform_8(%arg0: i32, %arg1: i32) -> (i32, i32) {
    %c0_i32 = arith.constant 0 : i32
    return %arg1, %arg0 : i32, i32
  }
  func.func @transform_9(%arg0: i32, %arg1: i32) -> (i32, i32) {
    %c0_i32 = arith.constant 0 : i32
    %c0_i32_0 = arith.constant 0 : i32
    return %c0_i32, %arg0 : i32, i32
  }
  func.func @transform_10(%arg0: i32, %arg1: i32) -> (i32, i32) {
    %c0_i32 = arith.constant 0 : i32
    %c0_i32_0 = arith.constant 0 : i32
    return %c0_i32, %arg0 : i32, i32
  }
  func.func @transform_11(%arg0: i32, %arg1: i32) -> (i32, i32) {
    %c0_i32 = arith.constant 0 : i32
    %c0_i32_0 = arith.constant 0 : i32
    return %c0_i32, %arg0 : i32, i32
  }
  func.func @transform_12(%arg0: i32, %arg1: i32) -> (i32, i32) {
    %c0_i32 = arith.constant 0 : i32
    %c0_i32_0 = arith.constant 0 : i32
    return %c0_i32, %arg0 : i32, i32
  }
}

module attributes {stable_mosaic.version = 11 : i64} {
  func.func @_stage2_kernel(%arg0: i32, %arg1: i32, %arg2: memref<2x256xf32, #tpu.memory_space<vmem>>, %arg3: memref<2x256xf32, #tpu.memory_space<vmem>>, %arg4: memref<1x256xf32, #tpu.memory_space<vmem>>, %arg5: memref<1x256xf32, #tpu.memory_space<vmem>>, %arg6: memref<256x32xf32, #tpu.memory_space<vmem>>, %arg7: memref<32x256xf32, #tpu.memory_space<vmem>>, %arg8: memref<256x256xbf16, #tpu.memory_space<vmem>>, %arg9: memref<1x256xf32, #tpu.memory_space<vmem>>, %arg10: memref<2x256xf32, #tpu.memory_space<vmem>>, %arg11: memref<2x256xf32, #tpu.memory_space<vmem>>) attributes {dimension_semantics = [#tpu.dimension_semantics<parallel>, #tpu.dimension_semantics<arbitrary>], iteration_bounds = array<i64: 1, 1>, scalar_prefetch = 0 : i64, scratch_operands = 1 : i64, tpu.core_type = #tpu.core_type<tc>, window_params = [{pipeline_mode = #tpu.pipeline_mode<synchronous>, transform_indices = @transform_0, window_bounds = array<i64: 2, 256>}, {transform_indices = @transform_1, window_bounds = array<i64: 2, 256>}, {pipeline_mode = #tpu.pipeline_mode<synchronous>, transform_indices = @transform_2, window_bounds = array<i64: 1, 256>}, {pipeline_mode = #tpu.pipeline_mode<synchronous>, transform_indices = @transform_3, window_bounds = array<i64: 1, 256>}, {pipeline_mode = #tpu.pipeline_mode<synchronous>, transform_indices = @transform_4, window_bounds = array<i64: 256, 32>}, {pipeline_mode = #tpu.pipeline_mode<synchronous>, transform_indices = @transform_5, window_bounds = array<i64: 32, 256>}, {transform_indices = @transform_6, window_bounds = array<i64: 256, 256>}, {transform_indices = @transform_7, window_bounds = array<i64: 1, 256>}, {transform_indices = @transform_8, window_bounds = array<i64: 2, 256>}]} {
    %c0_i32 = arith.constant 0 : i32
    %0 = arith.cmpi eq, %arg1, %c0_i32 : i32
    %1 = arith.extui %0 : i1 to i32
    %c0_i32_0 = arith.constant 0 : i32
    %2 = arith.cmpi ne, %1, %c0_i32_0 : i32
    scf.if %2 {
      %c0_9 = arith.constant 0 : index
      %c0_10 = arith.constant 0 : index
      %16 = vector.load %arg2[%c0_9, %c0_10] : memref<2x256xf32, #tpu.memory_space<vmem>>, vector<2x256xf32>
      %c0_11 = arith.constant 0 : index
      %c0_12 = arith.constant 0 : index
      %17 = vector.load %arg6[%c0_11, %c0_12] : memref<256x32xf32, #tpu.memory_space<vmem>>, vector<256x32xf32>
      %c0_13 = arith.constant 0 : index
      %c0_14 = arith.constant 0 : index
      %18 = vector.load %arg7[%c0_13, %c0_14] : memref<32x256xf32, #tpu.memory_space<vmem>>, vector<32x256xf32>
      %c0_15 = arith.constant 0 : index
      %c0_16 = arith.constant 0 : index
      %19 = vector.load %arg4[%c0_15, %c0_16] : memref<1x256xf32, #tpu.memory_space<vmem>>, vector<1x256xf32>
      %c0_17 = arith.constant 0 : index
      %c0_18 = arith.constant 0 : index
      %20 = vector.load %arg5[%c0_17, %c0_18] : memref<1x256xf32, #tpu.memory_space<vmem>>, vector<1x256xf32>
      %cst_19 = arith.constant dense<0.000000e+00> : vector<2x32xf32>
      %21 = tpu.matmul %16, %17, %cst_19 {dimension_numbers = #tpu.dot_dimension_numbers<[1], [0], [0], [1], [0, 0, 1, 1], [], []>} : vector<2x256xf32>, vector<256x32xf32>, vector<2x32xf32> -> vector<2x32xf32>
      %22 = arith.mulf %16, %16 : vector<2x256xf32>
      %cst_20 = arith.constant dense<0.000000e+00> : vector<2x32xf32>
      %23 = tpu.matmul %22, %17, %cst_20 {dimension_numbers = #tpu.dot_dimension_numbers<[1], [0], [0], [1], [0, 0, 1, 1], [], []>} : vector<2x256xf32>, vector<256x32xf32>, vector<2x32xf32> -> vector<2x32xf32>
      %cst_21 = arith.constant dense<0.000000e+00> : vector<2x256xf32>
      %24 = tpu.matmul %21, %18, %cst_21 {dimension_numbers = #tpu.dot_dimension_numbers<[1], [0], [0], [1], [0, 0, 1, 1], [], []>} : vector<2x32xf32>, vector<32x256xf32>, vector<2x256xf32> -> vector<2x256xf32>
      %cst_22 = arith.constant dense<0.000000e+00> : vector<2x256xf32>
      %25 = tpu.matmul %23, %18, %cst_22 {dimension_numbers = #tpu.dot_dimension_numbers<[1], [0], [0], [1], [0, 0, 1, 1], [], []>} : vector<2x32xf32>, vector<32x256xf32>, vector<2x256xf32> -> vector<2x256xf32>
      %26 = arith.mulf %24, %24 : vector<2x256xf32>
      %27 = arith.subf %25, %26 : vector<2x256xf32>
      %cst_23 = arith.constant 9.99999997E-7 : f32
      %28 = vector.broadcast %cst_23 : f32 to vector<2x256xf32>
      %29 = arith.addf %27, %28 : vector<2x256xf32>
      %30 = math.rsqrt %29 : vector<2x256xf32>
      %31 = arith.subf %16, %24 : vector<2x256xf32>
      %32 = arith.mulf %31, %30 : vector<2x256xf32>
      %33 = vector.broadcast %19 : vector<1x256xf32> to vector<2x256xf32>
      %34 = arith.mulf %32, %33 : vector<2x256xf32>
      %35 = vector.broadcast %20 : vector<1x256xf32> to vector<2x256xf32>
      %36 = arith.addf %34, %35 : vector<2x256xf32>
      %37 = arith.negf %36 : vector<2x256xf32>
      %38 = math.exp %37 : vector<2x256xf32>
      %cst_24 = arith.constant 1.000000e+00 : f32
      %39 = vector.broadcast %cst_24 : f32 to vector<2x256xf32>
      %40 = arith.addf %39, %38 : vector<2x256xf32>
      %41 = arith.divf %39, %40 : vector<2x256xf32>
      %42 = arith.mulf %36, %41 : vector<2x256xf32>
      %c0_25 = arith.constant 0 : index
      %c0_26 = arith.constant 0 : index
      %43 = vector.load %arg11[%c0_25, %c0_26] : memref<2x256xf32, #tpu.memory_space<vmem>>, vector<2x256xf32>
      tpu.vector_store %arg11[%c0_25, %c0_26], %42 {strides = array<i32>} : memref<2x256xf32, #tpu.memory_space<vmem>>, vector<2x256xf32>,
      %cst_27 = arith.constant 0.000000e+00 : f32
      %44 = vector.broadcast %cst_27 : f32 to vector<2x256xf32>
      %c0_28 = arith.constant 0 : index
      %c0_29 = arith.constant 0 : index
      %45 = vector.load %arg10[%c0_28, %c0_29] : memref<2x256xf32, #tpu.memory_space<vmem>>, vector<2x256xf32>
      tpu.vector_store %arg10[%c0_28, %c0_29], %44 {strides = array<i32>} : memref<2x256xf32, #tpu.memory_space<vmem>>, vector<2x256xf32>,
    } else {
    }
    %c256_i32 = arith.constant 256 : i32
    %3 = arith.muli %arg1, %c256_i32 : i32
    %4 = tpu.assume_multiple %3, 128 : i32
    %c0 = arith.constant 0 : index
    %5 = arith.index_cast %4 : i32 to index
    %6 = vector.load %arg11[%c0, %5] : memref<2x256xf32, #tpu.memory_space<vmem>>, vector<2x256xf32>
    %7 = arith.truncf %6 : vector<2x256xf32> to vector<2x256xbf16>
    %c0_1 = arith.constant 0 : index
    %c0_2 = arith.constant 0 : index
    %8 = vector.load %arg10[%c0_1, %c0_2] : memref<2x256xf32, #tpu.memory_space<vmem>>, vector<2x256xf32>
    %c0_3 = arith.constant 0 : index
    %c0_4 = arith.constant 0 : index
    %9 = vector.load %arg8[%c0_3, %c0_4] : memref<256x256xbf16, #tpu.memory_space<vmem>>, vector<256x256xbf16>
    %cst = arith.constant dense<0.000000e+00> : vector<2x256xf32>
    %10 = tpu.matmul %7, %9, %cst {dimension_numbers = #tpu.dot_dimension_numbers<[1], [0], [0], [1], [0, 0, 1, 1], [], []>} : vector<2x256xbf16>, vector<256x256xbf16>, vector<2x256xf32> -> vector<2x256xf32>
    %11 = arith.addf %8, %10 : vector<2x256xf32>
    %c0_5 = arith.constant 0 : index
    %c0_6 = arith.constant 0 : index
    %12 = vector.load %arg10[%c0_5, %c0_6] : memref<2x256xf32, #tpu.memory_space<vmem>>, vector<2x256xf32>
    tpu.vector_store %arg10[%c0_5, %c0_6], %11 {strides = array<i32>} : memref<2x256xf32, #tpu.memory_space<vmem>>, vector<2x256xf32>,
    %c0_i32_7 = arith.constant 0 : i32
    %13 = arith.cmpi eq, %arg1, %c0_i32_7 : i32
    %14 = arith.extui %13 : i1 to i32
    %c0_i32_8 = arith.constant 0 : i32
    %15 = arith.cmpi ne, %14, %c0_i32_8 : i32
    scf.if %15 {
      %c0_9 = arith.constant 0 : index
      %c0_10 = arith.constant 0 : index
      %16 = vector.load %arg10[%c0_9, %c0_10] : memref<2x256xf32, #tpu.memory_space<vmem>>, vector<2x256xf32>
      %c0_11 = arith.constant 0 : index
      %c0_12 = arith.constant 0 : index
      %17 = vector.load %arg3[%c0_11, %c0_12] : memref<2x256xf32, #tpu.memory_space<vmem>>, vector<2x256xf32>
      %c0_13 = arith.constant 0 : index
      %c0_14 = arith.constant 0 : index
      %18 = vector.load %arg9[%c0_13, %c0_14] : memref<1x256xf32, #tpu.memory_space<vmem>>, vector<1x256xf32>
      %19 = vector.broadcast %18 : vector<1x256xf32> to vector<2x256xf32>
      %20 = arith.addf %17, %19 : vector<2x256xf32>
      %21 = arith.addf %16, %20 : vector<2x256xf32>
      %c0_15 = arith.constant 0 : index
      %c0_16 = arith.constant 0 : index
      %22 = vector.load %arg10[%c0_15, %c0_16] : memref<2x256xf32, #tpu.memory_space<vmem>>, vector<2x256xf32>
      tpu.vector_store %arg10[%c0_15, %c0_16], %21 {strides = array<i32>} : memref<2x256xf32, #tpu.memory_space<vmem>>, vector<2x256xf32>,
    } else {
    }
    return
  }
  func.func @transform_0(%arg0: i32, %arg1: i32) -> (i32, i32) {
    %c0_i32 = arith.constant 0 : i32
    %c0_i32_0 = arith.constant 0 : i32
    %c0_i32_1 = arith.constant 0 : i32
    return %c0_i32, %c0_i32_0 : i32, i32
  }
  func.func @transform_1(%arg0: i32, %arg1: i32) -> (i32, i32) {
    %c0_i32 = arith.constant 0 : i32
    %c0_i32_0 = arith.constant 0 : i32
    return %c0_i32, %arg0 : i32, i32
  }
  func.func @transform_2(%arg0: i32, %arg1: i32) -> (i32, i32) {
    %c0_i32 = arith.constant 0 : i32
    %c0_i32_0 = arith.constant 0 : i32
    %c0_i32_1 = arith.constant 0 : i32
    return %c0_i32, %c0_i32_0 : i32, i32
  }
  func.func @transform_3(%arg0: i32, %arg1: i32) -> (i32, i32) {
    %c0_i32 = arith.constant 0 : i32
    %c0_i32_0 = arith.constant 0 : i32
    %c0_i32_1 = arith.constant 0 : i32
    return %c0_i32, %c0_i32_0 : i32, i32
  }
  func.func @transform_4(%arg0: i32, %arg1: i32) -> (i32, i32) {
    %c0_i32 = arith.constant 0 : i32
    %c0_i32_0 = arith.constant 0 : i32
    %c0_i32_1 = arith.constant 0 : i32
    return %c0_i32, %c0_i32_0 : i32, i32
  }
  func.func @transform_5(%arg0: i32, %arg1: i32) -> (i32, i32) {
    %c0_i32 = arith.constant 0 : i32
    %c0_i32_0 = arith.constant 0 : i32
    %c0_i32_1 = arith.constant 0 : i32
    return %c0_i32, %c0_i32_0 : i32, i32
  }
  func.func @transform_6(%arg0: i32, %arg1: i32) -> (i32, i32) {
    %c0_i32 = arith.constant 0 : i32
    return %arg1, %arg0 : i32, i32
  }
  func.func @transform_7(%arg0: i32, %arg1: i32) -> (i32, i32) {
    %c0_i32 = arith.constant 0 : i32
    %c0_i32_0 = arith.constant 0 : i32
    return %c0_i32, %arg0 : i32, i32
  }
  func.func @transform_8(%arg0: i32, %arg1: i32) -> (i32, i32) {
    %c0_i32 = arith.constant 0 : i32
    %c0_i32_0 = arith.constant 0 : i32
    return %c0_i32, %arg0 : i32, i32
  }
}

module attributes {stable_mosaic.version = 11 : i64} {
  func.func @_stage3_kernel(%arg0: i32, %arg1: i32, %arg2: memref<2x256xf32, #tpu.memory_space<vmem>>, %arg3: memref<256x256xbf16, #tpu.memory_space<vmem>>, %arg4: memref<1x256xf32, #tpu.memory_space<vmem>>, %arg5: memref<2x256xf32, #tpu.memory_space<vmem>>) attributes {dimension_semantics = [#tpu.dimension_semantics<parallel>, #tpu.dimension_semantics<arbitrary>], iteration_bounds = array<i64: 1, 1>, scalar_prefetch = 0 : i64, scratch_operands = 0 : i64, tpu.core_type = #tpu.core_type<tc>, window_params = [{transform_indices = @transform_0, window_bounds = array<i64: 2, 256>}, {transform_indices = @transform_1, window_bounds = array<i64: 256, 256>}, {transform_indices = @transform_2, window_bounds = array<i64: 1, 256>}, {transform_indices = @transform_3, window_bounds = array<i64: 2, 256>}]} {
    %c0_i32 = arith.constant 0 : i32
    %0 = arith.cmpi eq, %arg1, %c0_i32 : i32
    %1 = arith.extui %0 : i1 to i32
    %c0_i32_0 = arith.constant 0 : i32
    %2 = arith.cmpi ne, %1, %c0_i32_0 : i32
    scf.if %2 {
      %cst_10 = arith.constant 0.000000e+00 : f32
      %13 = vector.broadcast %cst_10 : f32 to vector<2x256xf32>
      %c0_11 = arith.constant 0 : index
      %c0_12 = arith.constant 0 : index
      %14 = vector.load %arg5[%c0_11, %c0_12] : memref<2x256xf32, #tpu.memory_space<vmem>>, vector<2x256xf32>
      tpu.vector_store %arg5[%c0_11, %c0_12], %13 {strides = array<i32>} : memref<2x256xf32, #tpu.memory_space<vmem>>, vector<2x256xf32>,
    } else {
    }
    %c0 = arith.constant 0 : index
    %c0_1 = arith.constant 0 : index
    %3 = vector.load %arg5[%c0, %c0_1] : memref<2x256xf32, #tpu.memory_space<vmem>>, vector<2x256xf32>
    %c0_2 = arith.constant 0 : index
    %c0_3 = arith.constant 0 : index
    %4 = vector.load %arg2[%c0_2, %c0_3] : memref<2x256xf32, #tpu.memory_space<vmem>>, vector<2x256xf32>
    %5 = arith.truncf %4 : vector<2x256xf32> to vector<2x256xbf16>
    %c0_4 = arith.constant 0 : index
    %c0_5 = arith.constant 0 : index
    %6 = vector.load %arg3[%c0_4, %c0_5] : memref<256x256xbf16, #tpu.memory_space<vmem>>, vector<256x256xbf16>
    %cst = arith.constant dense<0.000000e+00> : vector<2x256xf32>
    %7 = tpu.matmul %5, %6, %cst {dimension_numbers = #tpu.dot_dimension_numbers<[1], [0], [0], [1], [0, 0, 1, 1], [], []>} : vector<2x256xbf16>, vector<256x256xbf16>, vector<2x256xf32> -> vector<2x256xf32>
    %8 = arith.addf %3, %7 : vector<2x256xf32>
    %c0_6 = arith.constant 0 : index
    %c0_7 = arith.constant 0 : index
    %9 = vector.load %arg5[%c0_6, %c0_7] : memref<2x256xf32, #tpu.memory_space<vmem>>, vector<2x256xf32>
    tpu.vector_store %arg5[%c0_6, %c0_7], %8 {strides = array<i32>} : memref<2x256xf32, #tpu.memory_space<vmem>>, vector<2x256xf32>,
    %c0_i32_8 = arith.constant 0 : i32
    %10 = arith.cmpi eq, %arg1, %c0_i32_8 : i32
    %11 = arith.extui %10 : i1 to i32
    %c0_i32_9 = arith.constant 0 : i32
    %12 = arith.cmpi ne, %11, %c0_i32_9 : i32
    scf.if %12 {
      %c0_10 = arith.constant 0 : index
      %c0_11 = arith.constant 0 : index
      %13 = vector.load %arg5[%c0_10, %c0_11] : memref<2x256xf32, #tpu.memory_space<vmem>>, vector<2x256xf32>
      %c0_12 = arith.constant 0 : index
      %c0_13 = arith.constant 0 : index
      %14 = vector.load %arg4[%c0_12, %c0_13] : memref<1x256xf32, #tpu.memory_space<vmem>>, vector<1x256xf32>
      %15 = vector.broadcast %14 : vector<1x256xf32> to vector<2x256xf32>
      %16 = arith.addf %13, %15 : vector<2x256xf32>
      %c0_14 = arith.constant 0 : index
      %c0_15 = arith.constant 0 : index
      %17 = vector.load %arg5[%c0_14, %c0_15] : memref<2x256xf32, #tpu.memory_space<vmem>>, vector<2x256xf32>
      tpu.vector_store %arg5[%c0_14, %c0_15], %16 {strides = array<i32>} : memref<2x256xf32, #tpu.memory_space<vmem>>, vector<2x256xf32>,
    } else {
    }
    return
  }
  func.func @transform_0(%arg0: i32, %arg1: i32) -> (i32, i32) {
    %c0_i32 = arith.constant 0 : i32
    %c0_i32_0 = arith.constant 0 : i32
    return %c0_i32, %arg1 : i32, i32
  }
  func.func @transform_1(%arg0: i32, %arg1: i32) -> (i32, i32) {
    %c0_i32 = arith.constant 0 : i32
    return %arg1, %arg0 : i32, i32
  }
  func.func @transform_2(%arg0: i32, %arg1: i32) -> (i32, i32) {
    %c0_i32 = arith.constant 0 : i32
    %c0_i32_0 = arith.constant 0 : i32
    return %c0_i32, %arg0 : i32, i32
  }
  func.func @transform_3(%arg0: i32, %arg1: i32) -> (i32, i32) {
    %c0_i32 = arith.constant 0 : i32
    %c0_i32_0 = arith.constant 0 : i32
    return %c0_i32, %arg0 : i32, i32
  }
}

</mosaic_0001>

<bundles_post_ra>
// kernel: upblock_flat.5
= control target key start
LH: loop header
LB: loop body
LE: loop exit
PB: predicated region body
PF: predicated region fallthrough
CT: control target
= control target key end

     0   :  { %v392_v36 = vmov 0.0   ;;  %v393_v37 = vmov 1983009808   ;;  %v273_v39 = vlaneseq  ;;  %s531_s1 = inlined_call_operand.vmem [shape: bf16[256,256], index: 1, kind: input, shape index: {}]   ;;  %s532_s0 = inlined_call_operand.vmem [shape: f32[2,256], index: 0, kind: input, shape index: {}]   ;;  %s533_s3 = inlined_call_operand.vmem [shape: f32[2,256], index: 3, kind: output, shape index: {}]   ;;  %s534_s2 = inlined_call_operand.vmem [shape: f32[1,256], index: 2, kind: input, shape index: {}]  }
   0x1   :  { %v344_v0 = vld [vmem:[%s531_s1 + $0x4] ss:$8 sps:$4 sm:$0xff]   ;;  %v346_v1 = vld [vmem:[%s531_s1] ss:$8 sps:$4 sm:$0xff]   ;;  %v347_v2 = vld [vmem:[%s531_s1 + $0x14] ss:$8 sps:$4 sm:$0xff]   ;;  %v271_v38 = vunpack.c.l.s4 %v393_v37 }
   0x2   :  { %226 = vmatprep.subr.bf16.mxu0 %v344_v0  ;;  %v349_v3 = vld [vmem:[%s531_s1 + $0x10] ss:$8 sps:$4 sm:$0xff]   ;;  %v350_v4 = vld [vmem:[%s531_s1 + $0x24] ss:$8 sps:$4 sm:$0xff]   ;;  %v352_v5 = vld [vmem:[%s531_s1 + $0x20] ss:$8 sps:$4 sm:$0xff]  }
   0x3   :  { %227 = vmatpush1.bf16.msra.mxu0 %v346_v1  ;;  %v353_v6 = vld [vmem:[%s531_s1 + $0x34] ss:$8 sps:$4 sm:$0xff]   ;;  %v355_v7 = vld [vmem:[%s531_s1 + $0x30] ss:$8 sps:$4 sm:$0xff]   ;;  %v356_v8 = vld [vmem:[%s531_s1 + $0x44] ss:$8 sps:$4 sm:$0xff]   ;;  %v272_v40 = vunpack.c.0.s8 %v271_v38 }
   0x4   :  { %228 = vmatprep.subr.bf16.mxu0 %v347_v2  ;;  %v358_v9 = vld [vmem:[%s531_s1 + $0x40] ss:$8 sps:$4 sm:$0xff]   ;;  %v359_v10 = vld [vmem:[%s531_s1 + $0x54] ss:$8 sps:$4 sm:$0xff]   ;;  %v361_v11 = vld [vmem:[%s531_s1 + $0x50] ss:$8 sps:$4 sm:$0xff]  }
   0x5   :  { %v362_v12 = vld [vmem:[%s531_s1 + $0x64] ss:$8 sps:$4 sm:$0xff]   ;;  %v309_v13 = vld.sshfl [vmem:[%s532_s0] sm:$0x33 pattern:$0x76325410] }
   0x6   :  { %v29_v14 = vcombine.high %v309_v13, %v309_v13  ;;  %v364_v15 = vld [vmem:[%s531_s1 + $0x60] ss:$8 sps:$4 sm:$0xff]   ;;  %v365_v16 = vld [vmem:[%s531_s1 + $0x74] ss:$8 sps:$4 sm:$0xff]   ;;  %v367_v18 = vld [vmem:[%s531_s1 + $0x70] ss:$8 sps:$4 sm:$0xff]   ;;  %v32_v35 = vpack.c.bf16 %v309_v13, %v309_v13 }
   0x7   :  { %229 = vmatpush1.bf16.msra.mxu0 %v349_v3  ;;  %v368_v19 = vld [vmem:[%s531_s1 + $0x84] ss:$8 sps:$4 sm:$0xff]   ;;  %v370_v20 = vld [vmem:[%s531_s1 + $0x80] ss:$8 sps:$4 sm:$0xff]   ;;  %v371_v21 = vld [vmem:[%s531_s1 + $0x94] ss:$8 sps:$4 sm:$0xff]  }
   0x8   :  { %230 = vmatprep.subr.bf16.mxu0 %v350_v4  ;;  %v33_v17 = vpack.c.bf16 %v29_v14, %v29_v14  ;;  %v373_v22 = vld [vmem:[%s531_s1 + $0x90] ss:$8 sps:$4 sm:$0xff]   ;;  %v374_v23 = vld [vmem:[%s531_s1 + $0xa4] ss:$8 sps:$4 sm:$0xff]   ;;  %v376_v24 = vld [vmem:[%s531_s1 + $0xa0] ss:$8 sps:$4 sm:$0xff]  }
   0x9   :  { %v377_v25 = vld [vmem:[%s531_s1 + $0xb4] ss:$8 sps:$4 sm:$0xff]   ;;  %v379_v26 = vld [vmem:[%s531_s1 + $0xb0] ss:$8 sps:$4 sm:$0xff]   ;;  %v380_v27 = vld [vmem:[%s531_s1 + $0xc4] ss:$8 sps:$4 sm:$0xff]  }
   0xa   :  { %258 = vmatprep.mubr.bf16.mxu0 %v33_v17  ;;  %v382_v28 = vld [vmem:[%s531_s1 + $0xc0] ss:$8 sps:$4 sm:$0xff]   ;;  %v383_v29 = vld [vmem:[%s531_s1 + $0xd4] ss:$8 sps:$4 sm:$0xff]   ;;  %v385_v30 = vld [vmem:[%s531_s1 + $0xd0] ss:$8 sps:$4 sm:$0xff]  }
   0xb   :  { %231 = vmatpush1.bf16.msra.mxu0 %v352_v5  ;;  %v386_v31 = vld [vmem:[%s531_s1 + $0xe4] ss:$8 sps:$4 sm:$0xff]   ;;  %v388_v32 = vld [vmem:[%s531_s1 + $0xe0] ss:$8 sps:$4 sm:$0xff]   ;;  %v389_v33 = vld [vmem:[%s531_s1 + $0xf4] ss:$8 sps:$4 sm:$0xff]  }
   0xc   :  { %232 = vmatprep.subr.bf16.mxu0 %v353_v6  ;;  %v391_v34 = vld [vmem:[%s531_s1 + $0xf0] ss:$8 sps:$4 sm:$0xff]   ;;  %18 = vst [vmem:[%s533_s3] sm:$0xf] %v392_v36  ;;  %v274_v41 = vshrl.u32 %v273_v39, 7  ;;  %v284_v47 = vld [vmem:[%s534_s2] sm:$0x3] }
   0xe   :  { %v275_v43 = vsub.s32 %v272_v40, %v274_v41  ;;  %v288_v44 = vsub.s32 0, %v274_v41  ;;  %v292_v45 = vsub.s32 1, %v274_v41 }
   0xf   :  { %233 = vmatpush1.bf16.msra.mxu0 %v355_v7 }
  0x10   :  { %234 = vmatprep.subr.bf16.mxu0 %v356_v8  ;;  %v289_v53 = vrot.slane %v284_v47, %v288_v44  ;;  %v293_v54 = vrot.slane %v284_v47, %v292_v45 }
  0x12   :  { %v294_v56 = vcombine.low %v289_v53, %v293_v54 }
  0x13   :  { %235 = vmatpush1.bf16.msra.mxu0 %v358_v9  ;;  %v19_v50 = vld [vmem:[%s533_s3] sm:$0xf] }
  0x14   :  { %236 = vmatprep.subr.bf16.mxu0 %v359_v10  ;;  %v301_v57 = vrot.slane %v294_v56, %v275_v43 }
  0x17   :  { %237 = vmatpush1.bf16.msra.mxu0 %v361_v11 }
  0x18   :  { %238 = vmatprep.subr.bf16.mxu0 %v362_v12 }
  0x1b   :  { %239 = vmatpush1.bf16.msra.mxu0 %v364_v15 }
  0x1c   :  { %240 = vmatprep.subr.bf16.mxu0 %v365_v16 }
  0x1f   :  { %241 = vmatpush1.bf16.msra.mxu0 %v367_v18 }
  0x20   :  { %242 = vmatprep.subr.bf16.mxu0 %v368_v19 }
  0x23   :  { %243 = vmatpush1.bf16.msra.mxu0 %v370_v20 }
  0x24   :  { %244 = vmatprep.subr.bf16.mxu0 %v371_v21 }
  0x27   :  { %245 = vmatpush1.bf16.msra.mxu0 %v373_v22 }
  0x28   :  { %246 = vmatprep.subr.bf16.mxu0 %v374_v23 }
  0x2b   :  { %247 = vmatpush1.bf16.msra.mxu0 %v376_v24 }
  0x2c   :  { %248 = vmatprep.subr.bf16.mxu0 %v377_v25 }
  0x2f   :  { %249 = vmatpush1.bf16.msra.mxu0 %v379_v26 }
  0x30   :  { %250 = vmatprep.subr.bf16.mxu0 %v380_v27 }
  0x33   :  { %251 = vmatpush1.bf16.msra.mxu0 %v382_v28 }
  0x34   :  { %252 = vmatprep.subr.bf16.mxu0 %v383_v29 }
  0x37   :  { %253 = vmatpush1.bf16.msra.mxu0 %v385_v30 }
  0x38   :  { %254 = vmatprep.subr.bf16.mxu0 %v386_v31 }
  0x3b   :  { %255 = vmatpush1.bf16.msra.mxu0 %v388_v32 }
  0x3c   :  { %256 = vmatprep.subr.bf16.mxu0 %v389_v33 }
  0x3f   :  { %257 = vmatpush1.bf16.msra.mxu0 %v391_v34 }
  0x42   :  { %259 = vmatmul.mubr.bf16.vlgmr.msra.gmra.mrb[0].mxu0 %v32_v35 }
 0x115   :  { %v260_v42 = vpop.f32.mrb[0].mxu0 }
 0x116   :  { %v262_v46 = vpop.f32.mrb[1].mxu0 }
 0x117   :  { %v269_v48 = vcombine.low %v260_v42, %v262_v46  ;;  %v264_v49 = vpop.f32.mrb[2].mxu0 }
 0x118   :  { %v265_v51 = vpop.f32.mrb[3].mxu0 }
 0x119   :  { %v276_v52 = vrot.slane %v269_v48, %v275_v43 }
 0x11b   :  { %v278_v55 = vadd.f32 %v276_v52, %v19_v50 }
 0x11d   :  { %279 = vst [vmem:[%s533_s3] sm:$0xf] %v278_v55 }
 0x124   :  { %v283_v58 = vld [vmem:[%s533_s3] sm:$0xf] }
 0x125   :  { %v303_v59 = vadd.f32 %v301_v57, %v283_v58 }
 0x127   :  { %304 = vst [vmem:[%s533_s3] sm:$0xf] %v303_v59 }

// kernel: upblock_flat.4
= control target key start
LH: loop header
LB: loop body
LE: loop exit
PB: predicated region body
PF: predicated region fallthrough
CT: control target
= control target key end

     0   :  { %v80_v0 = vlaneseq  ;;  %v1010_v4 = vmov 1983009808   ;;  %vm239_vm0 = vcmask 261120   ;;  %s1348_s4 = inlined_call_operand.vmem [shape: f32[256,32], index: 4, kind: input, shape index: {}]   ;;  %s1349_s0 = inlined_call_operand.vmem [shape: f32[2,256], index: 0, kind: input, shape index: {}]   ;;  %s1350_s5 = inlined_call_operand.vmem [shape: f32[32,256], index: 5, kind: input, shape index: {}]   ;;  %s1351_s8 = inlined_call_operand.vmem [shape: f32[2,256], index: 8, kind: output, shape index: {}]   ;;  %s1352_s6 = inlined_call_operand.vmem [shape: bf16[256,256], index: 6, kind: input, shape index: {}]   ;;  %s1353_s2 = inlined_call_operand.vmem [shape: f32[1,256], index: 2, kind: input, shape index: {}]   ;;  %s1354_s3 = inlined_call_operand.vmem [shape: f32[1,256], index: 3, kind: input, shape index: {}]   ;;  %s1355_s7 = inlined_call_operand.vmem [shape: f32[1,256], index: 7, kind: input, shape index: {}]   ;;  %s1356_s1 = inlined_call_operand.vmem [shape: f32[2,256], index: 1, kind: input, shape index: {}]  }
   0x1   :  { %v50_v1 = vld [vmem:[%s1348_s4 + $0x80] sm:$0xff]  ;;  %v51_v2 = vld [vmem:[%s1348_s4 + $0x88] sm:$0xff]  ;;  %v78_v5 = vunpack.c.l.s4 %v1010_v4  ;;  %v52_v8 = vld [vmem:[%s1348_s4 + $0x90] sm:$0xff] }
   0x2   :  { %v34_v3 = vld [vmem:[%s1348_s4] sm:$0xff]  ;;  %v1066_v6 = vpack.c.bf16 %v51_v2, %v50_v1  ;;  %v35_v7 = vld [vmem:[%s1348_s4 + $0x8] sm:$0xff]  ;;  %v53_v9 = vld [vmem:[%s1348_s4 + $0x98] sm:$0xff]  ;;  %v1094_v17 = vshrl.u32 %v80_v0, 7 }
   0x3   :  { %v1077_v10 = vpack.c.bf16 %v35_v7, %v34_v3  ;;  %v1079_v11 = vpack.c.bf16 %v53_v9, %v52_v8  ;;  %v36_v12 = vld [vmem:[%s1348_s4 + $0x10] sm:$0xff]  ;;  %v37_v13 = vld [vmem:[%s1348_s4 + $0x18] sm:$0xff]  ;;  %v54_v14 = vld [vmem:[%s1348_s4 + $0xa0] sm:$0xff]  ;;  %v79_v16 = vunpack.c.0.s8 %v78_v5  ;;  %v1011_v8 = vmov 0.0  }
   0x4   :  { %873 = vmatprep.subr.bf16.mxu1 %v1066_v6  ;;  %v55_v15 = vld [vmem:[%s1348_s4 + $0xa8] sm:$0xff]  ;;  %v1097_v18 = vpack.c.bf16 %v37_v13, %v36_v12  ;;  %v38_v20 = vld [vmem:[%s1348_s4 + $0x20] sm:$0xff]  ;;  %v56_v22 = vld [vmem:[%s1348_s4 + $0xb0] sm:$0xff]  ;;  %307 = vmatprep.mubr.f32.mxu0 %v1011_v8  ;;  %466 = vst [vmem:[%s1351_s8] sm:$0xf] %v1011_v8 }
   0x5   :  { %875 = vmatpush3.bf16.msra.mxu1 %v1077_v10  ;;  %v1100_v19 = vpack.c.bf16 %v55_v15, %v54_v14  ;;  %v39_v21 = vld [vmem:[%s1348_s4 + $0x28] sm:$0xff]  ;;  %v57_v23 = vld [vmem:[%s1348_s4 + $0xb8] sm:$0xff]  ;;  %v1115_v24 = vsub.s32 %v79_v16, %v1094_v17  ;;  %v40_v27 = vld [vmem:[%s1348_s4 + $0x30] sm:$0xff] }
   0x6   :  { %877 = vmatprep.subr.bf16.mxu1 %v1079_v11  ;;  %v1118_v25 = vpack.c.bf16 %v39_v21, %v38_v20  ;;  %v884_v26 = vpack.c.bf16 %v57_v23, %v56_v22  ;;  %v41_v28 = vld [vmem:[%s1348_s4 + $0x38] sm:$0xff]  ;;  %v58_v29 = vld [vmem:[%s1348_s4 + $0xc0] sm:$0xff]  ;;  %v59_v30 = vld [vmem:[%s1348_s4 + $0xc8] sm:$0xff] }
   0x7   :  { %v1136_v31 = vld [vmem:[%s1349_s0] sm:$0xf]  ;;  %v67_v33 = vld [vmem:[%s1350_s5 + $0x8] sm:$0xff]  ;;  %v69_v34 = vld [vmem:[%s1350_s5 + $0x18] sm:$0xff]  ;;  %v886_v36 = vpack.c.bf16 %v41_v28, %v40_v27  ;;  %v888_v39 = vpack.c.bf16 %v59_v30, %v58_v29 }
   0x8   :  { %v83_v32 = vrot.slane %v1136_v31, %v1115_v24  ;;  %v66_v35 = vld [vmem:[%s1350_s5] sm:$0xff]  ;;  %v936_v37 = vpack.c.bf16 %v69_v34, %v67_v33  ;;  %v68_v38 = vld [vmem:[%s1350_s5 + $0x10] sm:$0xff]  ;;  %v43_v41 = vld [vmem:[%s1348_s4 + $0x48] sm:$0xff]  ;;  %v157_v59 = vmul.f32 %v1136_v31, %v1136_v31 }
   0x9   :  { %879 = vmatpush3.bf16.msra.mxu1 %v1097_v18  ;;  %v42_v40 = vld [vmem:[%s1348_s4 + $0x40] sm:$0xff]  ;;  %v938_v43 = vpack.c.bf16 %v68_v38, %v66_v35  ;;  %v60_v44 = vld [vmem:[%s1348_s4 + $0xd0] sm:$0xff]  ;;  %v61_v45 = vld [vmem:[%s1348_s4 + $0xd8] sm:$0xff] }
   0xa   :  { %881 = vmatprep.subr.bf16.mxu1 %v1100_v19  ;;  %v84_v42 = vcombine.high %v83_v32, %v83_v32  ;;  %937 = vmatprep.subr.bf16.mxu0 %v936_v37  ;;  %v890_v46 = vpack.c.bf16 %v43_v41, %v42_v40  ;;  %v892_v47 = vpack.c.bf16 %v61_v45, %v60_v44  ;;  %v44_v48 = vld [vmem:[%s1348_s4 + $0x50] sm:$0xff]  ;;  %v45_v49 = vld [vmem:[%s1348_s4 + $0x58] sm:$0xff]  ;;  %v62_v50 = vld [vmem:[%s1348_s4 + $0xe0] sm:$0xff] }
   0xb   :  { %939 = vmatpush1.bf16.msra.mxu0 %v938_v43  ;;  %v63_v51 = vld [vmem:[%s1348_s4 + $0xe8] sm:$0xff]  ;;  %v894_v52 = vpack.c.bf16 %v45_v49, %v44_v48  ;;  %v46_v54 = vld [vmem:[%s1348_s4 + $0x60] sm:$0xff]  ;;  %v64_v56 = vld [vmem:[%s1348_s4 + $0xf0] sm:$0xff]  ;;  %v165_v0 = vrot.slane %v157_v59, %v1115_v24 }
   0xc   :  { %151 = vmatprep.mubr.f32.mxu1 %v84_v42  ;;  %v896_v53 = vpack.c.bf16 %v63_v51, %v62_v50  ;;  %v47_v55 = vld [vmem:[%s1348_s4 + $0x68] sm:$0xff]  ;;  %v65_v57 = vld [vmem:[%s1348_s4 + $0xf8] sm:$0xff]  ;;  %v48_v61 = vld [vmem:[%s1348_s4 + $0x70] sm:$0xff] }
   0xd   :  { %883 = vmatpush3.bf16.msra.mxu1 %v1118_v25  ;;  %v898_v58 = vpack.c.bf16 %v47_v55, %v46_v54  ;;  %v900_v60 = vpack.c.bf16 %v65_v57, %v64_v56  ;;  %v49_v62 = vld [vmem:[%s1348_s4 + $0x78] sm:$0xff]  ;;  %v166_v1 = vcombine.high %v165_v0, %v165_v0  ;;  %v71_v2 = vld [vmem:[%s1350_s5 + $0x28] sm:$0xff]  ;;  %v70_v5 = vld [vmem:[%s1350_s5 + $0x20] sm:$0xff] }
   0xe   :  { %885 = vmatprep.subr.bf16.mxu1 %v884_v26  ;;  %v902_v63 = vpack.c.bf16 %v49_v62, %v48_v61  ;;  %v73_v3 = vld [vmem:[%s1350_s5 + $0x38] sm:$0xff]  ;;  %v956_v15 = vld [vmem:[%s1352_s6 + $0x4] ss:$8 sps:$4 sm:$0xff]   ;;  %v954_v16 = vld [vmem:[%s1352_s6] ss:$8 sps:$4 sm:$0xff]   ;;  %v423_v61 = vsub.s32 0, %v1094_v17 }
   0xf   :  { %v940_v4 = vpack.c.bf16 %v73_v3, %v71_v2  ;;  %v962_v20 = vld [vmem:[%s1352_s6 + $0x24] ss:$8 sps:$4 sm:$0xff]   ;;  %v960_v21 = vld [vmem:[%s1352_s6 + $0x20] ss:$8 sps:$4 sm:$0xff]   ;;  %v965_v22 = vld [vmem:[%s1352_s6 + $0x34] ss:$8 sps:$4 sm:$0xff]  }
  0x10   :  { %v963_v23 = vld [vmem:[%s1352_s6 + $0x30] ss:$8 sps:$4 sm:$0xff]   ;;  %v971_v27 = vld [vmem:[%s1352_s6 + $0x54] ss:$8 sps:$4 sm:$0xff]   ;;  %v974_v29 = vld [vmem:[%s1352_s6 + $0x64] ss:$8 sps:$4 sm:$0xff]  }
  0x11   :  { %887 = vmatpush3.bf16.msra.mxu1 %v886_v36  ;;  %941 = vmatprep.subr.bf16.mxu0 %v940_v4  ;;  %v969_v28 = vld [vmem:[%s1352_s6 + $0x50] ss:$8 sps:$4 sm:$0xff]   ;;  %v972_v30 = vld [vmem:[%s1352_s6 + $0x60] ss:$8 sps:$4 sm:$0xff]   ;;  %v980_v34 = vld [vmem:[%s1352_s6 + $0x84] ss:$8 sps:$4 sm:$0xff]  }
  0x12   :  { %889 = vmatprep.subr.bf16.mxu1 %v888_v39  ;;  %v975_v33 = vld [vmem:[%s1352_s6 + $0x70] ss:$8 sps:$4 sm:$0xff]   ;;  %v978_v35 = vld [vmem:[%s1352_s6 + $0x80] ss:$8 sps:$4 sm:$0xff]   ;;  %v986_v38 = vld [vmem:[%s1352_s6 + $0xa4] ss:$8 sps:$4 sm:$0xff]  }
  0x13   :  { %v989_v40 = vld [vmem:[%s1352_s6 + $0xb4] ss:$8 sps:$4 sm:$0xff]   ;;  %v987_v41 = vld [vmem:[%s1352_s6 + $0xb0] ss:$8 sps:$4 sm:$0xff]   ;;  %v992_v42 = vld [vmem:[%s1352_s6 + $0xc4] ss:$8 sps:$4 sm:$0xff]  }
  0x14   :  { %v995_v44 = vld [vmem:[%s1352_s6 + $0xd4] ss:$8 sps:$4 sm:$0xff]   ;;  %v993_v45 = vld [vmem:[%s1352_s6 + $0xd0] ss:$8 sps:$4 sm:$0xff]   ;;  %v427_v62 = vsub.s32 1, %v1094_v17 }
  0x15   :  { %891 = vmatpush3.bf16.msra.mxu1 %v890_v46  ;;  %v1001_v48 = vld [vmem:[%s1352_s6 + $0xf4] ss:$8 sps:$4 sm:$0xff]   ;;  %v999_v49 = vld [vmem:[%s1352_s6 + $0xf0] ss:$8 sps:$4 sm:$0xff]  }
  0x16   :  { %893 = vmatprep.subr.bf16.mxu1 %v892_v47 }
  0x19   :  { %895 = vmatpush3.bf16.msra.mxu1 %v894_v52 }
  0x1a   :  { %897 = vmatprep.subr.bf16.mxu1 %v896_v53 }
  0x1d   :  { %899 = vmatpush3.bf16.msra.mxu1 %v898_v58 }
  0x1e   :  { %901 = vmatprep.subr.bf16.mxu1 %v900_v60 }
  0x21   :  { %903 = vmatpush3.bf16.msra.mxu1 %v902_v63 }
  0x22   :  { %905 = vmatprep.subr.bf16.mxu1 %v1066_v6  ;;  %v72_v6 = vld [vmem:[%s1350_s5 + $0x30] sm:$0xff] }
  0x23   :  { %v942_v7 = vpack.c.bf16 %v72_v6, %v70_v5 }
  0x24   :  { %152 = vmatmul.mubr.f32.vlgmr.msra.gmra.mrb[0].mxu1 %v83_v32  ;;  %v977_v32 = vld [vmem:[%s1352_s6 + $0x74] ss:$8 sps:$4 sm:$0xff]  }
  0x25   :  { %907 = vmatpush3.bf16.msra.mxu1 %v1077_v10  ;;  %233 = vmatprep.mubr.f32.mxu1 %v166_v1 }
  0x26   :  { %909 = vmatprep.subr.bf16.mxu1 %v1079_v11  ;;  %943 = vmatpush1.bf16.msra.mxu0 %v942_v7 }
  0x27   :  { %679 = vmatprep.subr.bf16.mxu0 %v956_v15 }
  0x29   :  { %911 = vmatpush3.bf16.msra.mxu1 %v1097_v18  ;;  %v959_v18 = vld [vmem:[%s1352_s6 + $0x14] ss:$8 sps:$4 sm:$0xff]  }
  0x2a   :  { %913 = vmatprep.subr.bf16.mxu1 %v1100_v19  ;;  %v957_v19 = vld [vmem:[%s1352_s6 + $0x10] ss:$8 sps:$4 sm:$0xff]  }
  0x2d   :  { %915 = vmatpush3.bf16.msra.mxu1 %v1118_v25  ;;  %v968_v25 = vld [vmem:[%s1352_s6 + $0x44] ss:$8 sps:$4 sm:$0xff]  }
  0x2e   :  { %917 = vmatprep.subr.bf16.mxu1 %v884_v26  ;;  %v966_v26 = vld [vmem:[%s1352_s6 + $0x40] ss:$8 sps:$4 sm:$0xff]  }
  0x31   :  { %919 = vmatpush3.bf16.msra.mxu1 %v886_v36  ;;  %v983_v36 = vld [vmem:[%s1352_s6 + $0x94] ss:$8 sps:$4 sm:$0xff]  }
  0x32   :  { %921 = vmatprep.subr.bf16.mxu1 %v888_v39  ;;  %v984_v39 = vld [vmem:[%s1352_s6 + $0xa0] ss:$8 sps:$4 sm:$0xff]  }
  0x35   :  { %923 = vmatpush3.bf16.msra.mxu1 %v890_v46  ;;  %v998_v46 = vld [vmem:[%s1352_s6 + $0xe4] ss:$8 sps:$4 sm:$0xff]  }
  0x36   :  { %925 = vmatprep.subr.bf16.mxu1 %v892_v47  ;;  %v996_v47 = vld [vmem:[%s1352_s6 + $0xe0] ss:$8 sps:$4 sm:$0xff]  }
  0x39   :  { %927 = vmatpush3.bf16.msra.mxu1 %v894_v52 }
  0x3a   :  { %929 = vmatprep.subr.bf16.mxu1 %v896_v53 }
  0x3d   :  { %931 = vmatpush3.bf16.msra.mxu1 %v898_v58 }
  0x3e   :  { %933 = vmatprep.subr.bf16.mxu1 %v900_v60 }
  0x41   :  { %935 = vmatpush3.bf16.msra.mxu1 %v902_v63  ;;  %v74_v63 = vld [vmem:[%s1353_s2] sm:$0x3] }
  0x42   :  { %945 = vmatprep.subr.bf16.mxu1 %v936_v37  ;;  %v981_v37 = vld [vmem:[%s1352_s6 + $0x90] ss:$8 sps:$4 sm:$0xff]   ;;  %v424_v1 = vrot.slane %v74_v63, %v423_v61  ;;  %v428_v2 = vrot.slane %v74_v63, %v427_v62 }
  0x44   :  { %234 = vmatmul.mubr.f32.vlgmr.msra.gmra.mrb[2].mxu1 %v165_v0  ;;  %v75_v0 = vld [vmem:[%s1354_s3] sm:$0x3] }
  0x45   :  { %947 = vmatpush1.bf16.msra.mxu1 %v938_v43  ;;  %381 = vmatprep.mubr.f32.mxu1 %v1011_v8  ;;  %v990_v43 = vld [vmem:[%s1352_s6 + $0xc0] ss:$8 sps:$4 sm:$0xff]   ;;  %v443_v3 = vrot.slane %v75_v0, %v423_v61 }
  0x46   :  { %949 = vmatprep.subr.bf16.mxu1 %v940_v4  ;;  %v447_v4 = vrot.slane %v75_v0, %v427_v62 }
  0x49   :  { %951 = vmatpush1.bf16.msra.mxu1 %v942_v7  ;;  %v429_v7 = vcombine.low %v424_v1, %v428_v2 }
  0xf7   :  { %v834_v9 = vpop.f32.mrb[0].mxu1 }
  0xf8   :  { %v835_v10 = vpop.f32.mrb[1].mxu1 }
  0xf9   :  { %v836_v11 = vadd.f32 %v835_v10, %v834_v9  ;;  %v448_v10 = vcombine.low %v443_v3, %v447_v4 }
  0xfb   :  { %766 = vmatmul.mubr.msk.f32.vlgmr.msra.gmra.mrb[0].mxu0 %vm239_vm0, %v836_v11 }
  0xfc   :  { %680 = vmatpush1.bf16.msra.mxu0 %v954_v16 }
  0xfd   :  { %681 = vmatprep.subr.bf16.mxu0 %v959_v18 }
 0x100   :  { %682 = vmatpush1.bf16.msra.mxu0 %v957_v19 }
 0x101   :  { %683 = vmatprep.subr.bf16.mxu0 %v962_v20 }
 0x104   :  { %684 = vmatpush1.bf16.msra.mxu0 %v960_v21 }
 0x105   :  { %685 = vmatprep.subr.bf16.mxu0 %v965_v22 }
 0x108   :  { %686 = vmatpush1.bf16.msra.mxu0 %v963_v23 }
 0x109   :  { %687 = vmatprep.subr.bf16.mxu0 %v968_v25 }
 0x10c   :  { %688 = vmatpush1.bf16.msra.mxu0 %v966_v26 }
 0x10d   :  { %689 = vmatprep.subr.bf16.mxu0 %v971_v27  ;;  %v738_v27 = vld [vmem:[%s1355_s7] sm:$0x3] }
 0x110   :  { %690 = vmatpush1.bf16.msra.mxu0 %v969_v28 }
 0x111   :  { %691 = vmatprep.subr.bf16.mxu0 %v974_v29  ;;  %v743_v29 = vrot.slane %v738_v27, %v423_v61 }
 0x114   :  { %692 = vmatpush1.bf16.msra.mxu0 %v972_v30  ;;  %v747_v30 = vrot.slane %v738_v27, %v427_v62 }
 0x115   :  { %693 = vmatprep.subr.bf16.mxu0 %v977_v32 }
 0x117   :  { %v869_v12 = vpop.f32.mrb[2].mxu1 }
 0x118   :  { %v870_v13 = vpop.f32.mrb[3].mxu1  ;;  %694 = vmatpush1.bf16.msra.mxu0 %v975_v33 }
 0x119   :  { %v871_v14 = vadd.f32 %v870_v13, %v869_v12  ;;  %695 = vmatprep.subr.bf16.mxu0 %v980_v34  ;;  %v436_v12 = vrot.slane %v429_v7, %v1115_v24 }
 0x11b   :  { %767 = vmatmul.mubr.msk.f32.vlgmr.msra.gmra.mrb[4].mxu1 %vm239_vm0, %v871_v14  ;;  %v455_v14 = vrot.slane %v448_v10, %v1115_v24 }
 0x11c   :  { %696 = vmatpush1.bf16.msra.mxu0 %v978_v35  ;;  %v486_v35 = vld [vmem:[%s1351_s8] sm:$0xf] }
 0x11d   :  { %697 = vmatprep.subr.bf16.mxu0 %v983_v36 }
 0x120   :  { %698 = vmatpush1.bf16.msra.mxu0 %v981_v37 }
 0x121   :  { %699 = vmatprep.subr.bf16.mxu0 %v986_v38  ;;  %v748_v38 = vcombine.low %v743_v29, %v747_v30 }
 0x124   :  { %700 = vmatpush1.bf16.msra.mxu0 %v984_v39 }
 0x125   :  { %701 = vmatprep.subr.bf16.mxu0 %v989_v40  ;;  %v755_v40 = vrot.slane %v748_v38, %v1115_v24 }
 0x128   :  { %702 = vmatpush1.bf16.msra.mxu0 %v987_v41  ;;  %v737_v41 = vld [vmem:[%s1356_s1] sm:$0xf] }
 0x129   :  { %703 = vmatprep.subr.bf16.mxu0 %v992_v42  ;;  %v757_v42 = vadd.f32 %v755_v40, %v737_v41 }
 0x12c   :  { %704 = vmatpush1.bf16.msra.mxu0 %v990_v43 }
 0x12d   :  { %705 = vmatprep.subr.bf16.mxu0 %v995_v44 }
 0x130   :  { %706 = vmatpush1.bf16.msra.mxu0 %v993_v45 }
 0x131   :  { %707 = vmatprep.subr.bf16.mxu0 %v998_v46 }
 0x134   :  { %708 = vmatpush1.bf16.msra.mxu0 %v996_v47 }
 0x135   :  { %709 = vmatprep.subr.bf16.mxu0 %v1001_v48 }
 0x138   :  { %710 = vmatpush1.bf16.msra.mxu0 %v999_v49 }
 0x1ce   :  { %v309_v50 = vpop.f32.mrb[0].mxu0 }
 0x1cf   :  { %v311_v51 = vpop.f32.mrb[1].mxu0  ;;  %v388_v53 = vmul.f32 %v309_v50, %v309_v50 }
 0x1d0   :  { %v398_v52 = vcombine.low %v309_v50, %v311_v51  ;;  %v389_v54 = vmul.f32 %v311_v51, %v311_v51 }
 0x1d2   :  { %v405_v6 = vrot.slane %v398_v52, %v1115_v24 }
 0x1d4   :  { %v407_v17 = vsub.f32 %v1136_v31, %v405_v6 }
 0x1ee   :  { %v383_v55 = vpop.f32.mrb[4].mxu1 }
 0x1ef   :  { %v390_v56 = vsub.f32 %v383_v55, %v388_v53  ;;  %v385_v57 = vpop.f32.mrb[5].mxu1 }
 0x1f0   :  { %v391_v58 = vsub.f32 %v385_v57, %v389_v54 }
 0x1f1   :  { %v392_v59 = vadd.f32 1e-06, %v390_v56 }
 0x1f2   :  { %v393_v60 = vadd.f32 1e-06, %v391_v58 }
 0x1f3   :  { %1002 = vrsqrt.f32 %v392_v59 }
 0x1f4   :  { %1004 = vrsqrt.f32 %v393_v60 }
 0x1fd   :  { %v1003_v5 = vpop.eup %1002 }
 0x1fe   :  { %v1005_v8 = vpop.eup %1004 }
 0x1ff   :  { %v410_v9 = vcombine.low %v1003_v5, %v1005_v8 }
 0x201   :  { %v417_v11 = vrot.slane %v410_v9, %v1115_v24 }
 0x203   :  { %v419_v13 = vmul.f32 %v417_v11, %v407_v17 }
 0x205   :  { %v438_v15 = vmul.f32 %v436_v12, %v419_v13 }
 0x207   :  { %v457_v16 = vadd.f32 %v455_v14, %v438_v15 }
 0x209   :  { %v768_v18 = vmul.f32 -1.442695, %v457_v16 }
 0x20b   :  { %1006 = vpow2.f32 %v768_v18 }
 0x215   :  { %v1007_v19 = vpop.eup %1006 }
 0x216   :  { %v461_v20 = vadd.f32 1.0, %v1007_v19 }
 0x218   :  { %1008 = vrcp.f32 %v461_v20 }
 0x222   :  { %v1009_v21 = vpop.eup %1008 }
 0x223   :  { %v464_v22 = vmul.f32 %v1009_v21, %v457_v16 }
 0x225   :  { %465 = vst [vmem:[#allocation2] sm:$0xf] %v464_v22 }
 0x22c   :  { %v769_v23 = vld.sshfl [vmem:[#allocation2] sm:$0x33 pattern:$0x76325410] }
 0x22d   :  { %v481_v25 = vcombine.high %v769_v23, %v769_v23  ;;  %v484_v26 = vpack.c.bf16 %v769_v23, %v769_v23 }
 0x22f   :  { %v485_v31 = vpack.c.bf16 %v481_v25, %v481_v25 }
 0x231   :  { %711 = vmatprep.mubr.bf16.mxu0 %v485_v31 }
 0x232   :  { %712 = vmatmul.mubr.bf16.vlgmr.msra.gmra.mrb[4].mxu0 %v484_v26 }
 0x305   :  { %v713_v28 = vpop.f32.mrb[4].mxu0 }
 0x306   :  { %v715_v32 = vpop.f32.mrb[5].mxu0 }
 0x307   :  { %v722_v33 = vcombine.low %v713_v28, %v715_v32  ;;  %v717_v34 = vpop.f32.mrb[6].mxu0 }
 0x308   :  { %v718_v36 = vpop.f32.mrb[7].mxu0 }
 0x309   :  { %v729_v37 = vrot.slane %v722_v33, %v1115_v24 }
 0x30b   :  { %v731_v39 = vadd.f32 %v729_v37, %v486_v35 }
 0x30d   :  { %732 = vst [vmem:[%s1351_s8] sm:$0xf] %v731_v39 }
 0x314   :  { %v736_v43 = vld [vmem:[%s1351_s8] sm:$0xf] }
 0x315   :  { %v758_v44 = vadd.f32 %v757_v42, %v736_v43 }
 0x317   :  { %759 = vst [vmem:[%s1351_s8] sm:$0xf] %v758_v44 }

// kernel: upblock_flat.3
= control target key start
LH: loop header
LB: loop body
LE: loop exit
PB: predicated region body
PF: predicated region fallthrough
CT: control target
= control target key end

     0   :  { %v1356_v0 = vmov 0.0|0.0   ;;  %vm1357_vm0 = vmmov 0   ;;  %v1358_v6 = vmov 0.0   ;;  %vm208_vm1 = vcmask 261120   ;;  %s1764_s4 = inlined_call_operand.vmem [shape: f32[128,32], index: 4, kind: input, shape index: {}]   ;;  %s1765_s0 = inlined_call_operand.vmem [shape: f32[2,128], index: 0, kind: input, shape index: {}]   ;;  %s1766_s5 = inlined_call_operand.vmem [shape: f32[32,128], index: 5, kind: input, shape index: {}]   ;;  %s1767_s8 = inlined_call_operand.vmem [shape: bf16[256,256], index: 8, kind: input, shape index: {}]   ;;  %s1768_s7 = inlined_call_operand.vmem [shape: bf16[256,256], index: 7, kind: input, shape index: {}]   ;;  %s1769_s1 = inlined_call_operand.vmem [shape: f32[2,128], index: 1, kind: input, shape index: {}]   ;;  %s1770_s6 = inlined_call_operand.vmem [shape: f32[2,256], index: 6, kind: input, shape index: {}]   ;;  %s1771_s2 = inlined_call_operand.vmem [shape: f32[1,128], index: 2, kind: input, shape index: {}]   ;;  %s1772_s3 = inlined_call_operand.vmem [shape: f32[1,128], index: 3, kind: input, shape index: {}]   ;;  %s1773_s12 = inlined_call_operand.vmem [shape: f32[2,256], index: 12, kind: output, shape index: {1}]   ;;  %s1774_s9 = inlined_call_operand.vmem [shape: f32[1,256], index: 9, kind: input, shape index: {}]   ;;  %s1775_s10 = inlined_call_operand.vmem [shape: f32[1,256], index: 10, kind: input, shape index: {}]   ;;  %s1776_s11 = inlined_call_operand.vmem [shape: f32[2,256], index: 11, kind: output, shape index: {0}]  }
   0x1   :  { %1186 = vmatprep.subr.bf16.mxu0 %v1356_v0  ;;  %v45_v1 = vld [vmem:[%s1764_s4] sm:$0xff]  ;;  %v46_v2 = vld [vmem:[%s1764_s4 + $0x8] sm:$0xff]  ;;  %1210 = vmatprep.subr.bf16.mxu1 %v1356_v0  ;;  %v47_v3 = vld [vmem:[%s1764_s4 + $0x10] sm:$0xff]  ;;  %393 = vst [vmem:[%s1773_s12] sm:$0xf] %v1358_v6 }
   0x2   :  { %v1187_v4 = vpack.c.bf16 %v46_v2, %v45_v1  ;;  %v48_v5 = vld [vmem:[%s1764_s4 + $0x18] sm:$0xff]  ;;  %1126 = vmatprep.mubr.msk.f32.mxu0 %vm1357_vm0, %v1358_v6  ;;  %1161 = vmatprep.mubr.msk.f32.mxu1 %vm1357_vm0, %v1358_v6  ;;  %v49_v8 = vld [vmem:[%s1764_s4 + $0x20] sm:$0xff]  ;;  %v50_v9 = vld [vmem:[%s1764_s4 + $0x28] sm:$0xff]  ;;  %392 = vst [vmem:[%s1776_s11] sm:$0xf] %v1358_v6 }
   0x3   :  { %v1190_v7 = vpack.c.bf16 %v48_v5, %v47_v3  ;;  %v1193_v10 = vpack.c.bf16 %v50_v9, %v49_v8  ;;  %v51_v11 = vld [vmem:[%s1764_s4 + $0x30] sm:$0xff]  ;;  %v52_v12 = vld [vmem:[%s1764_s4 + $0x38] sm:$0xff]  ;;  %v53_v14 = vld [vmem:[%s1764_s4 + $0x40] sm:$0xff] }
   0x4   :  { %1188 = vmatpush3.bf16.msra.mxu0 %v1187_v4  ;;  %1212 = vmatpush3.bf16.msra.mxu1 %v1187_v4  ;;  %v1196_v13 = vpack.c.bf16 %v52_v12, %v51_v11  ;;  %v54_v15 = vld [vmem:[%s1764_s4 + $0x48] sm:$0xff]  ;;  %v55_v17 = vld [vmem:[%s1764_s4 + $0x50] sm:$0xff]  ;;  %v56_v18 = vld [vmem:[%s1764_s4 + $0x58] sm:$0xff] }
   0x5   :  { %1189 = vmatprep.subr.bf16.mxu0 %v1356_v0  ;;  %1213 = vmatprep.subr.bf16.mxu1 %v1356_v0  ;;  %v1199_v16 = vpack.c.bf16 %v54_v15, %v53_v14  ;;  %v1202_v19 = vpack.c.bf16 %v56_v18, %v55_v17  ;;  %v57_v20 = vld [vmem:[%s1764_s4 + $0x60] sm:$0xff]  ;;  %v58_v21 = vld [vmem:[%s1764_s4 + $0x68] sm:$0xff]  ;;  %v59_v23 = vld [vmem:[%s1764_s4 + $0x70] sm:$0xff] }
   0x6   :  { %v1205_v22 = vpack.c.bf16 %v58_v21, %v57_v20  ;;  %v60_v24 = vld [vmem:[%s1764_s4 + $0x78] sm:$0xff]  ;;  %v1494_v26 = vld [vmem:[%s1765_s0] sm:$0x3]  ;;  %v62_v28 = vld [vmem:[%s1766_s5 + $0x8] sm:$0xff] }
   0x7   :  { %v1208_v25 = vpack.c.bf16 %v60_v24, %v59_v23  ;;  %v61_v27 = vld [vmem:[%s1766_s5] sm:$0xff]  ;;  %v137_v29 = vmul.f32 %v1494_v26, %v1494_v26  ;;  %v63_v31 = vld [vmem:[%s1766_s5 + $0x10] sm:$0xff]  ;;  %v64_v32 = vld [vmem:[%s1766_s5 + $0x18] sm:$0xff] }
   0x8   :  { %1191 = vmatpush3.bf16.msra.mxu0 %v1190_v7  ;;  %1215 = vmatpush3.bf16.msra.mxu1 %v1190_v7  ;;  %v1235_v30 = vpack.c.bf16 %v62_v28, %v61_v27  ;;  %v1238_v33 = vpack.c.bf16 %v64_v32, %v63_v31  ;;  %v1252_v34 = vld [vmem:[%s1767_s8 + $0x4] ss:$8 sps:$4 sm:$0xff]   ;;  %v1250_v35 = vld [vmem:[%s1767_s8] ss:$8 sps:$4 sm:$0xff]   ;;  %v1258_v42 = vld [vmem:[%s1767_s8 + $0x14] ss:$8 sps:$4 sm:$0xff]  }
   0x9   :  { %1192 = vmatprep.subr.bf16.mxu0 %v1356_v0  ;;  %1216 = vmatprep.subr.bf16.mxu1 %v1356_v0  ;;  %v1255_v40 = vld [vmem:[%s1768_s7 + $0x4] ss:$8 sps:$4 sm:$0xff]   ;;  %v1253_v41 = vld [vmem:[%s1768_s7] ss:$8 sps:$4 sm:$0xff]   ;;  %v1256_v43 = vld [vmem:[%s1767_s8 + $0x10] ss:$8 sps:$4 sm:$0xff]  }
   0xa   :  { %v1261_v44 = vld [vmem:[%s1768_s7 + $0x14] ss:$8 sps:$4 sm:$0xff]   ;;  %v1259_v45 = vld [vmem:[%s1768_s7 + $0x10] ss:$8 sps:$4 sm:$0xff]   ;;  %v1264_v46 = vld [vmem:[%s1767_s8 + $0x24] ss:$8 sps:$4 sm:$0xff]  }
   0xb   :  { %v1262_v47 = vld [vmem:[%s1767_s8 + $0x20] ss:$8 sps:$4 sm:$0xff]   ;;  %v1267_v48 = vld [vmem:[%s1768_s7 + $0x24] ss:$8 sps:$4 sm:$0xff]   ;;  %v1270_v50 = vld [vmem:[%s1767_s8 + $0x34] ss:$8 sps:$4 sm:$0xff]  }
   0xc   :  { %1194 = vmatpush3.bf16.msra.mxu0 %v1193_v10  ;;  %1218 = vmatpush3.bf16.msra.mxu1 %v1193_v10  ;;  %v1265_v49 = vld [vmem:[%s1768_s7 + $0x20] ss:$8 sps:$4 sm:$0xff]   ;;  %v1268_v51 = vld [vmem:[%s1767_s8 + $0x30] ss:$8 sps:$4 sm:$0xff]   ;;  %v1273_v52 = vld [vmem:[%s1768_s7 + $0x34] ss:$8 sps:$4 sm:$0xff]  }
   0xd   :  { %1195 = vmatprep.subr.bf16.mxu0 %v1356_v0  ;;  %1219 = vmatprep.subr.bf16.mxu1 %v1356_v0  ;;  %v1271_v53 = vld [vmem:[%s1768_s7 + $0x30] ss:$8 sps:$4 sm:$0xff]   ;;  %v1276_v54 = vld [vmem:[%s1767_s8 + $0x44] ss:$8 sps:$4 sm:$0xff]   ;;  %v1274_v55 = vld [vmem:[%s1767_s8 + $0x40] ss:$8 sps:$4 sm:$0xff]  }
   0xe   :  { %v1279_v56 = vld [vmem:[%s1768_s7 + $0x44] ss:$8 sps:$4 sm:$0xff]   ;;  %v1277_v57 = vld [vmem:[%s1768_s7 + $0x40] ss:$8 sps:$4 sm:$0xff]   ;;  %v1282_v58 = vld [vmem:[%s1767_s8 + $0x54] ss:$8 sps:$4 sm:$0xff]  }
   0xf   :  { %v1280_v59 = vld [vmem:[%s1767_s8 + $0x50] ss:$8 sps:$4 sm:$0xff]   ;;  %v1285_v60 = vld [vmem:[%s1768_s7 + $0x54] ss:$8 sps:$4 sm:$0xff]   ;;  %v1288_v62 = vld [vmem:[%s1767_s8 + $0x64] ss:$8 sps:$4 sm:$0xff]  }
  0x10   :  { %1197 = vmatpush3.bf16.msra.mxu0 %v1196_v13  ;;  %1221 = vmatpush3.bf16.msra.mxu1 %v1196_v13  ;;  %v1283_v61 = vld [vmem:[%s1768_s7 + $0x50] ss:$8 sps:$4 sm:$0xff]   ;;  %v1286_v63 = vld [vmem:[%s1767_s8 + $0x60] ss:$8 sps:$4 sm:$0xff]   ;;  %v1294_v3 = vld [vmem:[%s1767_s8 + $0x74] ss:$8 sps:$4 sm:$0xff]  }
  0x11   :  { %1198 = vmatprep.subr.bf16.mxu0 %v1356_v0  ;;  %1222 = vmatprep.subr.bf16.mxu1 %v1356_v0  ;;  %v383_v1 = vld [vmem:[%s1769_s1] sm:$0x3]  ;;  %v1292_v5 = vld [vmem:[%s1767_s8 + $0x70] ss:$8 sps:$4 sm:$0xff]   ;;  %v1297_v7 = vld [vmem:[%s1768_s7 + $0x74] ss:$8 sps:$4 sm:$0xff]  }
  0x12   :  { %v1289_v2 = vld [vmem:[%s1768_s7 + $0x60] ss:$8 sps:$4 sm:$0xff]   ;;  %v983_v4 = vmul.f32 -1.442695, %v383_v1  ;;  %v1295_v8 = vld [vmem:[%s1768_s7 + $0x70] ss:$8 sps:$4 sm:$0xff]  }
  0x13   :  { %v1300_v9 = vld [vmem:[%s1767_s8 + $0x84] ss:$8 sps:$4 sm:$0xff]   ;;  %v1298_v10 = vld [vmem:[%s1767_s8 + $0x80] ss:$8 sps:$4 sm:$0xff]   ;;  %v1306_v13 = vld [vmem:[%s1767_s8 + $0x94] ss:$8 sps:$4 sm:$0xff]  }
  0x14   :  { %1200 = vmatpush3.bf16.msra.mxu0 %v1199_v16  ;;  %1224 = vmatpush3.bf16.msra.mxu1 %v1199_v16  ;;  %1346 = vpow2.f32 %v983_v4  ;;  %v1303_v11 = vld [vmem:[%s1768_s7 + $0x84] ss:$8 sps:$4 sm:$0xff]   ;;  %v1301_v12 = vld [vmem:[%s1768_s7 + $0x80] ss:$8 sps:$4 sm:$0xff]   ;;  %v1304_v14 = vld [vmem:[%s1767_s8 + $0x90] ss:$8 sps:$4 sm:$0xff]  }
  0x15   :  { %1201 = vmatprep.subr.bf16.mxu0 %v1356_v0  ;;  %1225 = vmatprep.subr.bf16.mxu1 %v1356_v0  ;;  %v1309_v15 = vld [vmem:[%s1768_s7 + $0x94] ss:$8 sps:$4 sm:$0xff]   ;;  %v1307_v17 = vld [vmem:[%s1768_s7 + $0x90] ss:$8 sps:$4 sm:$0xff]   ;;  %v1312_v18 = vld [vmem:[%s1767_s8 + $0xa4] ss:$8 sps:$4 sm:$0xff]  }
  0x16   :  { %v1315_v21 = vld [vmem:[%s1768_s7 + $0xa4] ss:$8 sps:$4 sm:$0xff]   ;;  %v1318_v23 = vld [vmem:[%s1767_s8 + $0xb4] ss:$8 sps:$4 sm:$0xff]   ;;  %v1316_v24 = vld [vmem:[%s1767_s8 + $0xb0] ss:$8 sps:$4 sm:$0xff]  }
  0x17   :  { %v1319_v27 = vld [vmem:[%s1768_s7 + $0xb0] ss:$8 sps:$4 sm:$0xff]   ;;  %v1324_v28 = vld [vmem:[%s1767_s8 + $0xc4] ss:$8 sps:$4 sm:$0xff]   ;;  %v1325_v31 = vld [vmem:[%s1768_s7 + $0xc0] ss:$8 sps:$4 sm:$0xff]  }
  0x18   :  { %1203 = vmatpush3.bf16.msra.mxu0 %v1202_v19  ;;  %1227 = vmatpush3.bf16.msra.mxu1 %v1202_v19  ;;  %v1310_v19 = vld [vmem:[%s1767_s8 + $0xa0] ss:$8 sps:$4 sm:$0xff]   ;;  %v1330_v32 = vld [vmem:[%s1767_s8 + $0xd4] ss:$8 sps:$4 sm:$0xff]  }
  0x19   :  { %1204 = vmatprep.subr.bf16.mxu0 %v1356_v0  ;;  %1228 = vmatprep.subr.bf16.mxu1 %v1356_v0 }
  0x1c   :  { %1206 = vmatpush3.bf16.msra.mxu0 %v1205_v22  ;;  %1230 = vmatpush3.bf16.msra.mxu1 %v1205_v22  ;;  %v1313_v22 = vld [vmem:[%s1768_s7 + $0xa0] ss:$8 sps:$4 sm:$0xff]  }
  0x1d   :  { %1207 = vmatprep.subr.bf16.mxu0 %v1356_v0  ;;  %1231 = vmatprep.subr.bf16.mxu1 %v1356_v0 }
  0x1e   :  { %v1347_v16 = vpop.eup %1346 }
  0x1f   :  { %v387_v20 = vadd.f32 1.0, %v1347_v16 }
  0x20   :  { %1209 = vmatpush3.bf16.msra.mxu0 %v1208_v25  ;;  %1233 = vmatpush3.bf16.msra.mxu1 %v1208_v25  ;;  %v1321_v25 = vld [vmem:[%s1768_s7 + $0xb4] ss:$8 sps:$4 sm:$0xff]  }
  0x21   :  { %1234 = vmatprep.subr.bf16.mxu0 %v1356_v0  ;;  %1240 = vmatprep.subr.bf16.mxu1 %v1356_v0  ;;  %1348 = vrcp.f32 %v387_v20 }
  0x23   :  { %1127 = vmatmul.mubr.f32.vlgmr.msra.gmra.mrb[0].mxu0 %v1494_v26  ;;  %1162 = vmatmul.mubr.f32.vlgmr.msra.gmra.mrb[0].mxu1 %v137_v29  ;;  %v1322_v29 = vld [vmem:[%s1767_s8 + $0xc0] ss:$8 sps:$4 sm:$0xff]  }
  0x24   :  { %1236 = vmatpush3.bf16.msra.mxu0 %v1235_v30  ;;  %1242 = vmatpush3.bf16.msra.mxu1 %v1235_v30  ;;  %v1327_v30 = vld [vmem:[%s1768_s7 + $0xc4] ss:$8 sps:$4 sm:$0xff]  }
  0x25   :  { %1237 = vmatprep.subr.bf16.mxu0 %v1356_v0  ;;  %1243 = vmatprep.subr.bf16.mxu1 %v1356_v0  ;;  %v1291_v0 = vld [vmem:[%s1768_s7 + $0x64] ss:$8 sps:$4 sm:$0xff]  }
  0x26   :  { %1172 = vmatprep.mubr.msk.f32.mxu0 %vm1357_vm0, %v1358_v6  ;;  %1183 = vmatprep.mubr.msk.f32.mxu1 %vm1357_vm0, %v1358_v6 }
  0x28   :  { %1239 = vmatpush3.bf16.msra.mxu0 %v1238_v33  ;;  %1245 = vmatpush3.bf16.msra.mxu1 %v1238_v33 }
  0x29   :  { %867 = vmatprep.subr.bf16.mxu1 %v1252_v34  ;;  %620 = vmatprep.subr.bf16.mxu0 %v1255_v40  ;;  %v1328_v34 = vld [vmem:[%s1767_s8 + $0xd0] ss:$8 sps:$4 sm:$0xff]   ;;  %v1339_v40 = vld [vmem:[%s1768_s7 + $0xe4] ss:$8 sps:$4 sm:$0xff]  }
  0x2b   :  { %v1349_v33 = vpop.eup %1348 }
  0xf6   :  { %v133_v36 = vpop.f32.mrb[0].mxu0  ;;  %v204_v37 = vpop.f32.mrb[0].mxu1 }
  0xf7   :  { %v1128_v38 = vpop.f32.mrb[1].mxu0  ;;  %1173 = vmatmul.mubr.msk.f32.vlgmr.msra.gmra.mrb[2].mxu0 %vm208_vm1, %v133_v36  ;;  %v1163_v39 = vpop.f32.mrb[1].mxu1  ;;  %1184 = vmatmul.mubr.msk.f32.vlgmr.msra.gmra.mrb[2].mxu1 %vm208_vm1, %v204_v37  ;;  %v1333_v36 = vld [vmem:[%s1768_s7 + $0xd4] ss:$8 sps:$4 sm:$0xff]   ;;  %v1331_v37 = vld [vmem:[%s1768_s7 + $0xd0] ss:$8 sps:$4 sm:$0xff]  }
  0xf8   :  { %868 = vmatpush1.bf16.msra.mxu1 %v1250_v35  ;;  %621 = vmatpush1.bf16.msra.mxu0 %v1253_v41  ;;  %v390_v35 = vmul.f32 %v1349_v33, %v383_v1  ;;  %v1334_v38 = vld [vmem:[%s1767_s8 + $0xe0] ss:$8 sps:$4 sm:$0xff]   ;;  %v1336_v39 = vld [vmem:[%s1767_s8 + $0xe4] ss:$8 sps:$4 sm:$0xff]  }
  0xf9   :  { %869 = vmatprep.subr.bf16.mxu1 %v1258_v42  ;;  %622 = vmatprep.subr.bf16.mxu0 %v1261_v44  ;;  %v1337_v41 = vld [vmem:[%s1768_s7 + $0xe0] ss:$8 sps:$4 sm:$0xff]   ;;  %v1340_v42 = vld [vmem:[%s1767_s8 + $0xf0] ss:$8 sps:$4 sm:$0xff]   ;;  %v1345_v44 = vld [vmem:[%s1768_s7 + $0xf4] ss:$8 sps:$4 sm:$0xff]  }
  0xfa   :  { %391 = vst [vmem:[#allocation2 + $0x2] sm:$0x3] %v390_v35 }
  0xfc   :  { %870 = vmatpush1.bf16.msra.mxu1 %v1256_v43  ;;  %623 = vmatpush1.bf16.msra.mxu0 %v1259_v45  ;;  %v1342_v43 = vld [vmem:[%s1767_s8 + $0xf4] ss:$8 sps:$4 sm:$0xff]   ;;  %v985_v45 = vld.sshfl [vmem:[%s1770_s6] sm:$0x33 pattern:$0x76325410] }
  0xfd   :  { %871 = vmatprep.subr.bf16.mxu1 %v1264_v46  ;;  %624 = vmatprep.subr.bf16.mxu0 %v1267_v48  ;;  %v422_v46 = vcombine.high %v985_v45, %v985_v45  ;;  %v425_v48 = vpack.c.bf16 %v985_v45, %v985_v45 }
 0x100   :  { %872 = vmatpush1.bf16.msra.mxu1 %v1262_v47  ;;  %625 = vmatpush1.bf16.msra.mxu0 %v1265_v49  ;;  %v1343_v47 = vld [vmem:[%s1768_s7 + $0xf0] ss:$8 sps:$4 sm:$0xff]   ;;  %v426_v49 = vpack.c.bf16 %v422_v46, %v422_v46 }
 0x101   :  { %873 = vmatprep.subr.bf16.mxu1 %v1270_v50  ;;  %626 = vmatprep.subr.bf16.mxu0 %v1273_v52 }
 0x102   :  { %899 = vmatprep.mubr.bf16.mxu1 %v426_v49 }
 0x104   :  { %874 = vmatpush1.bf16.msra.mxu1 %v1268_v51  ;;  %627 = vmatpush1.bf16.msra.mxu0 %v1271_v53 }
 0x105   :  { %875 = vmatprep.subr.bf16.mxu1 %v1276_v54  ;;  %628 = vmatprep.subr.bf16.mxu0 %v1279_v56 }
 0x108   :  { %876 = vmatpush1.bf16.msra.mxu1 %v1274_v55  ;;  %629 = vmatpush1.bf16.msra.mxu0 %v1277_v57 }
 0x109   :  { %877 = vmatprep.subr.bf16.mxu1 %v1282_v58  ;;  %630 = vmatprep.subr.bf16.mxu0 %v1285_v60 }
 0x10c   :  { %878 = vmatpush1.bf16.msra.mxu1 %v1280_v59  ;;  %631 = vmatpush1.bf16.msra.mxu0 %v1283_v61  ;;  %v980_v59 = vld [vmem:[%s1771_s2] ss:$0 sm:$0xff] }
 0x10d   :  { %879 = vmatprep.subr.bf16.mxu1 %v1288_v62  ;;  %632 = vmatprep.subr.bf16.mxu0 %v1291_v0  ;;  %v981_v61 = vld [vmem:[%s1772_s3] ss:$0 sm:$0xff]  ;;  %v667_v62 = vlaneseq }
 0x10f   :  { %v668_v1 = vshrl.u32 %v667_v62, 7 }
 0x110   :  { %880 = vmatpush1.bf16.msra.mxu1 %v1286_v63  ;;  %633 = vmatpush1.bf16.msra.mxu0 %v1289_v2  ;;  %v925_v2 = vld [vmem:[%s1774_s9] sm:$0x3] }
 0x111   :  { %881 = vmatprep.subr.bf16.mxu1 %v1294_v3  ;;  %634 = vmatprep.subr.bf16.mxu0 %v1297_v7  ;;  %v929_v3 = vsub.s32 0, %v668_v1  ;;  %v933_v4 = vsub.s32 1, %v668_v1 }
 0x113   :  { %v934_v7 = vrot.slane %v925_v2, %v933_v4 }
 0x114   :  { %882 = vmatpush1.bf16.msra.mxu1 %v1292_v5  ;;  %635 = vmatpush1.bf16.msra.mxu0 %v1295_v8  ;;  %v930_v5 = vrot.slane %v925_v2, %v929_v3 }
 0x115   :  { %883 = vmatprep.subr.bf16.mxu1 %v1300_v9  ;;  %636 = vmatprep.subr.bf16.mxu0 %v1303_v11 }
 0x116   :  { %v935_v8 = vcombine.low %v930_v5, %v934_v7 }
 0x118   :  { %884 = vmatpush1.bf16.msra.mxu1 %v1298_v10  ;;  %637 = vmatpush1.bf16.msra.mxu0 %v1301_v12 }
 0x119   :  { %885 = vmatprep.subr.bf16.mxu1 %v1306_v13  ;;  %638 = vmatprep.subr.bf16.mxu0 %v1309_v15 }
 0x11c   :  { %886 = vmatpush1.bf16.msra.mxu1 %v1304_v14  ;;  %639 = vmatpush1.bf16.msra.mxu0 %v1307_v17  ;;  %v1359_v17 = vmov 1983009808  }
 0x11d   :  { %887 = vmatprep.subr.bf16.mxu1 %v1312_v18  ;;  %640 = vmatprep.subr.bf16.mxu0 %v1315_v21  ;;  %v665_v18 = vunpack.c.l.s4 %v1359_v17 }
 0x120   :  { %888 = vmatpush1.bf16.msra.mxu1 %v1310_v19  ;;  %641 = vmatpush1.bf16.msra.mxu0 %v1313_v22  ;;  %v666_v19 = vunpack.c.0.s8 %v665_v18 }
 0x121   :  { %889 = vmatprep.subr.bf16.mxu1 %v1318_v23  ;;  %642 = vmatprep.subr.bf16.mxu0 %v1321_v25  ;;  %v947_v23 = vld [vmem:[%s1775_s10] sm:$0x3] }
 0x122   :  { %v669_v21 = vsub.s32 %v666_v19, %v668_v1 }
 0x124   :  { %890 = vmatpush1.bf16.msra.mxu1 %v1316_v24  ;;  %643 = vmatpush1.bf16.msra.mxu0 %v1319_v27  ;;  %v674_v27 = vld [vmem:[%s1773_s12] sm:$0xf] }
 0x125   :  { %891 = vmatprep.subr.bf16.mxu1 %v1324_v28  ;;  %644 = vmatprep.subr.bf16.mxu0 %v1327_v30  ;;  %v952_v30 = vrot.slane %v947_v23, %v929_v3 }
 0x128   :  { %892 = vmatpush1.bf16.msra.mxu1 %v1322_v29  ;;  %645 = vmatpush1.bf16.msra.mxu0 %v1325_v31  ;;  %v956_v31 = vrot.slane %v947_v23, %v933_v4 }
 0x129   :  { %893 = vmatprep.subr.bf16.mxu1 %v1330_v32  ;;  %646 = vmatprep.subr.bf16.mxu0 %v1333_v36 }
 0x12a   :  { %v957_v33 = vcombine.low %v952_v30, %v956_v31 }
 0x12c   :  { %894 = vmatpush1.bf16.msra.mxu1 %v1328_v34  ;;  %647 = vmatpush1.bf16.msra.mxu0 %v1331_v37  ;;  %v964_v34 = vrot.slane %v957_v33, %v669_v21 }
 0x12d   :  { %895 = vmatprep.subr.bf16.mxu1 %v1336_v39  ;;  %648 = vmatprep.subr.bf16.mxu0 %v1339_v40  ;;  %v427_v40 = vld [vmem:[%s1776_s11] sm:$0xf] }
 0x130   :  { %896 = vmatpush1.bf16.msra.mxu1 %v1334_v38  ;;  %649 = vmatpush1.bf16.msra.mxu0 %v1337_v41 }
 0x131   :  { %897 = vmatprep.subr.bf16.mxu1 %v1342_v43  ;;  %650 = vmatprep.subr.bf16.mxu0 %v1345_v44  ;;  %v942_v44 = vrot.slane %v935_v8, %v669_v21 }
 0x134   :  { %898 = vmatpush1.bf16.msra.mxu1 %v1340_v42  ;;  %651 = vmatpush1.bf16.msra.mxu0 %v1343_v47 }
 0x137   :  { %900 = vmatmul.mubr.bf16.vlgmr.msra.gmra.mrb[4].mxu1 %v425_v48 }
 0x1ca   :  { %v278_v50 = vpop.f32.mrb[2].mxu0  ;;  %v351_v51 = vpop.f32.mrb[2].mxu1 }
 0x1cb   :  { %v355_v52 = vmul.f32 %v278_v50, %v278_v50  ;;  %v1174_v53 = vpop.f32.mrb[3].mxu0  ;;  %v1185_v54 = vpop.f32.mrb[3].mxu1  ;;  %v359_v57 = vsub.f32 %v1494_v26, %v278_v50 }
 0x1cd   :  { %v356_v55 = vsub.f32 %v351_v51, %v355_v52 }
 0x1cf   :  { %v357_v56 = vadd.f32 1e-06, %v356_v55 }
 0x1d1   :  { %1350 = vrsqrt.f32 %v357_v56 }
 0x1db   :  { %v1351_v58 = vpop.eup %1350 }
 0x1dc   :  { %v360_v60 = vmul.f32 %v1351_v58, %v359_v57 }
 0x1de   :  { %v367_v63 = vmul.f32 %v980_v59, %v360_v60 }
 0x1e0   :  { %v374_v0 = vadd.f32 %v981_v61, %v367_v63 }
 0x1e2   :  { %v982_v26 = vmul.f32 -1.442695, %v374_v0 }
 0x1e4   :  { %1352 = vpow2.f32 %v982_v26 }
 0x1ee   :  { %v1353_v9 = vpop.eup %1352 }
 0x1ef   :  { %v378_v10 = vadd.f32 1.0, %v1353_v9 }
 0x1f1   :  { %1354 = vrcp.f32 %v378_v10 }
 0x1fb   :  { %v1355_v11 = vpop.eup %1354 }
 0x1fc   :  { %v381_v12 = vmul.f32 %v1355_v11, %v374_v0 }
 0x1fe   :  { %382 = vst [vmem:[#allocation2] sm:$0x3] %v381_v12 }
 0x205   :  { %v984_v13 = vld.sshfl [vmem:[#allocation2] sm:$0x33 pattern:$0x76325410] }
 0x206   :  { %v408_v14 = vcombine.high %v984_v13, %v984_v13  ;;  %v411_v16 = vpack.c.bf16 %v984_v13, %v984_v13 }
 0x208   :  { %v412_v15 = vpack.c.bf16 %v408_v14, %v408_v14 }
 0x20a   :  { %652 = vmatprep.mubr.bf16.mxu0 %v412_v15  ;;  %v901_v20 = vpop.f32.mrb[4].mxu1 }
 0x20b   :  { %653 = vmatmul.mubr.bf16.vlgmr.msra.gmra.mrb[4].mxu0 %v411_v16  ;;  %v903_v22 = vpop.f32.mrb[5].mxu1 }
 0x20c   :  { %v910_v24 = vcombine.low %v901_v20, %v903_v22  ;;  %v905_v25 = vpop.f32.mrb[6].mxu1 }
 0x20d   :  { %v906_v28 = vpop.f32.mrb[7].mxu1 }
 0x20e   :  { %v917_v29 = vrot.slane %v910_v24, %v669_v21 }
 0x210   :  { %v919_v32 = vadd.f32 %v917_v29, %v674_v27 }
 0x212   :  { %920 = vst [vmem:[%s1773_s12] sm:$0xf] %v919_v32 }
 0x219   :  { %v946_v6 = vld [vmem:[%s1773_s12] sm:$0xf] }
 0x21a   :  { %v966_v35 = vadd.f32 %v964_v34, %v946_v6 }
 0x21c   :  { %967 = vst [vmem:[%s1773_s12] sm:$0xf] %v966_v35 }
 0x2de   :  { %v654_v36 = vpop.f32.mrb[4].mxu0 }
 0x2df   :  { %v656_v37 = vpop.f32.mrb[5].mxu0 }
 0x2e0   :  { %v663_v38 = vcombine.low %v654_v36, %v656_v37  ;;  %v658_v39 = vpop.f32.mrb[6].mxu0 }
 0x2e1   :  { %v659_v41 = vpop.f32.mrb[7].mxu0 }
 0x2e2   :  { %v670_v42 = vrot.slane %v663_v38, %v669_v21 }
 0x2e4   :  { %v672_v43 = vadd.f32 %v670_v42, %v427_v40 }
 0x2e6   :  { %673 = vst [vmem:[%s1776_s11] sm:$0xf] %v672_v43 }
 0x2ed   :  { %v924_v45 = vld [vmem:[%s1776_s11] sm:$0xf] }
 0x2ee   :  { %v944_v46 = vadd.f32 %v942_v44, %v924_v45 }
 0x2f0   :  { %945 = vst [vmem:[%s1776_s11] sm:$0xf] %v944_v46 }

</bundles_post_ra>
